<compile_context>
chip_gen: v6e
topology: v6e:2x2x1
jax: 0.10.0
libtpu: 0.0.40
codegen_flags: <defaults>
</compile_context>

<pallas_src>
import functools

import jax
import jax.numpy as jnp
from jax.experimental import pallas as pl
from jax.experimental.pallas import tpu as pltpu


def _round_up(x, m):
    return ((x + m - 1) // m) * m


def span_embed_kernel(spans_ref, text_ref, wemb_ref, out_ref, *, n_pad, tn, group):
    """One grid step = one (batch element, span tile).

    spans_ref : (B * N_pad * 2,) int32  SMEM (scalar prefetch; [b, n, {start, end}])
    text_ref  : (S, H)                  VMEM (resident across the span-tile axis)
    wemb_ref  : (rows, Wp)              VMEM (width table, lane-padded to 128)
    out_ref   : (TN, 2H + Wp)           VMEM output tile
    """
    b = pl.program_id(0)
    j = pl.program_id(1)
    S, H = text_ref.shape
    rows, Wp = wemb_ref.shape

    tile_base = (b * n_pad + j * tn) * 2
    n_groups = tn // group

    def group_body(g, carry):
        n0 = pl.multiple_of(g * group, group)
        start_rows, end_rows, width_rows = [], [], []
        for r in range(group):
            base = tile_base + (n0 + r) * 2
            start = spans_ref[base]
            end = spans_ref[base + 1]
            # Dynamic VMEM reads have no bounds check: clamp defensively so a
            # malformed span can never read adjacent VMEM (scalar-slot ops).
            start = jnp.clip(start, 0, S - 1)
            end = jnp.clip(end, 0, S - 1)
            width = jnp.clip(end - start, 0, rows - 1)
            start_rows.append(text_ref[pl.ds(start, 1), :])
            end_rows.append(text_ref[pl.ds(end, 1), :])
            width_rows.append(wemb_ref[pl.ds(width, 1), :])
        # One full, lane-aligned (group, slab) store per slab (unmasked vst)
        # instead of `group` single-sublane masked stores per slab.
        out_ref[pl.ds(n0, group), 0:H] = jnp.concatenate(start_rows, axis=0)
        out_ref[pl.ds(n0, group), H:2 * H] = jnp.concatenate(end_rows, axis=0)
        out_ref[pl.ds(n0, group), 2 * H:2 * H + Wp] = jnp.concatenate(width_rows, axis=0)
        return carry

    jax.lax.fori_loop(0, n_groups, group_body, 0, unroll=2)


def text_to_span_embeds(text_embeddings, spans, width_embedding_weight,
                        *, span_tile=256):
    """Pallas wrapper.

    Returns (B, N, 2*H + Wp) with the width slab zero lane-padded from W to
    Wp = round_up(W, 128). Keeping the padded layout avoids re-streaming the
    whole output tensor through HBM just to strip zeros; downstream matmuls
    should zero-pad their weight rows instead (numerically free).
    """
    B, S, H = text_embeddings.shape
    _, N, _ = spans.shape
    MAXW, W = width_embedding_weight.shape
    dtype = text_embeddings.dtype
    itemsize = jnp.dtype(dtype).itemsize

    # Sublane group size: 8 rows for 4-byte dtypes, 16 for 2-byte (packed).
    group = max(8, 32 // itemsize)

    # Span tile along N: multiple of `group`, capped so the double-buffered
    # output tile stays small even on v7x (64 MiB VMEM).
    tn = min(_round_up(N, group), _round_up(span_tile, group))
    n_pad = _round_up(N, tn)

    # Lane-pad width-embedding columns to a full 128-lane slab (free: the
    # (MAXW, 20) table pads to 128 lanes in VMEM anyway); cast to output dtype.
    Wp = _round_up(max(W, 1), 128)
    wemb = jnp.pad(width_embedding_weight.astype(dtype), ((0, 0), (0, Wp - W)))

    # width = end - start < S, so only the first S rows of the table can ever
    # be hit; keep an 8-sublane-aligned prefix resident in VMEM.
    rows = min(MAXW, _round_up(max(S, 8), 8))
    wemb = wemb[:rows]

    out_dim = 2 * H + Wp

    spans_i32 = spans.astype(jnp.int32)
    if n_pad != N:
        spans_i32 = jnp.pad(spans_i32, ((0, 0), (0, n_pad - N), (0, 0)))
    spans_flat = spans_i32.reshape(-1)

    kernel = functools.partial(span_embed_kernel, n_pad=n_pad, tn=tn, group=group)

    # VMEM budget: double-buffered text + output blocks, resident width table.
    vmem_est = (2 * S * H * itemsize + 2 * tn * out_dim * itemsize
                + 2 * rows * Wp * itemsize)
    vmem_limit = int(min(max(vmem_est + (8 << 20), 32 << 20), 60 << 20))

    out = pl.pallas_call(
        kernel,
        out_shape=jax.ShapeDtypeStruct((B, n_pad, out_dim), dtype),
        grid_spec=pltpu.PrefetchScalarGridSpec(
            num_scalar_prefetch=1,
            grid=(B, n_pad // tn),
            in_specs=[
                # Text block index is constant along the span-tile axis ->
                # stays resident (no re-DMA) while j iterates.
                pl.BlockSpec((None, S, H), lambda b, j, sp: (b, 0, 0)),
                pl.BlockSpec((rows, Wp), lambda b, j, sp: (0, 0)),
            ],
            out_specs=pl.BlockSpec((None, tn, out_dim),
                                   lambda b, j, sp: (b, j, 0)),
        ),
        compiler_params=pltpu.CompilerParams(
            dimension_semantics=("parallel", "parallel"),
            vmem_limit_bytes=vmem_limit),
    )(spans_flat, text_embeddings, wemb)

    if n_pad != N:
        out = out[:, :N]
    return out


# ---------------------------------------------------------------------------
# Pure-JAX reference (matches the PyTorch batched_index_select + embedding)
# ---------------------------------------------------------------------------
def ref_text_to_span_embeds(text_embeddings, spans, width_embedding_weight):
    starts = spans[..., 0]                                 # (B, N)
    ends = spans[..., 1]                                   # (B, N)
    start_e = jnp.take_along_axis(text_embeddings, starts[..., None], axis=1)
    end_e = jnp.take_along_axis(text_embeddings, ends[..., None], axis=1)
    width_e = width_embedding_weight[ends - starts]        # (B, N, Wdim)
    return jnp.concatenate([start_e, end_e, width_e], axis=-1)


if __name__ == "__main__":
    # Small shapes consistent with the module (hidden=768 is hard-coded in it).
    B, S, H = 2, 16, 768          # batch, seq, encoder hidden
    N = 16                        # number of candidate spans per example
    MAX_WIDTH = 512               # SpanModel default max_width
    WIDTH_DIM = 20                # SpanModel default width_embedding_dim
    VOCAB = 100

    key = jax.random.PRNGKey(0)
    k_tok, k_wemb, k_ids, k_start, k_len = jax.random.split(key, 5)

    # xavier_normal_ for the width embedding: std = sqrt(2 / (fan_in + fan_out))
    xavier_std = (2.0 / (MAX_WIDTH + WIDTH_DIM)) ** 0.5
    width_embedding_weight = (
        jax.random.normal(k_wemb, (MAX_WIDTH, WIDTH_DIM), jnp.float32) * xavier_std)

    # Stand-in encoder: deterministic token embedding table lookup.
    token_embedding = jax.random.normal(k_tok, (VOCAB, H), jnp.float32) * 0.02

    input_ids = jax.random.randint(k_ids, (B, S), 0, VOCAB)
    attention_mask = jnp.ones((B, S), jnp.float32)
    text_embeddings = token_embedding[input_ids] * attention_mask[..., None]

    span_starts = jax.random.randint(k_start, (B, N), 0, S)
    span_lens = jax.random.randint(k_len, (B, N), 0, S)
    span_ends = jnp.clip(span_starts + span_lens, 0, S - 1)
    spans = jnp.stack(
        [jnp.minimum(span_starts, span_ends), jnp.maximum(span_starts, span_ends)],
        axis=-1).astype(jnp.int32)                         # (B, N, 2)

    # --- run the Pallas kernel ---------------------------------------------
    span_embeddings = text_to_span_embeds(text_embeddings, spans,
                                          width_embedding_weight)
    span_embeddings = jax.block_until_ready(span_embeddings)

    # --- verify against the pure-JAX reference -----------------------------
    expected = ref_text_to_span_embeds(text_embeddings, spans,
                                       width_embedding_weight)
    Wp = ((WIDTH_DIM + 127) // 128) * 128
    assert span_embeddings.shape == (B, N, 2 * H + Wp)
    assert jnp.allclose(span_embeddings[..., : 2 * H + WIDTH_DIM], expected,
                        atol=1e-6, rtol=1e-6)
    # Lane padding of the width slab must be exactly zero.
    assert jnp.all(span_embeddings[..., 2 * H + WIDTH_DIM:] == 0)

    print("KERNEL_OK")
</pallas_src>

<mosaic_0001>
module attributes {stable_mosaic.version = 11 : i64} {
  func.func @span_embed_kernel(%arg0: i32, %arg1: i32, %arg2: memref<64xi32, #tpu.memory_space<smem>>, %arg3: memref<1x16x768xf32, #tpu.memory_space<vmem>>, %arg4: memref<16x128xf32, #tpu.memory_space<vmem>>, %arg5: memref<1x16x1664xf32, #tpu.memory_space<vmem>>) attributes {dimension_semantics = [#tpu.dimension_semantics<parallel>, #tpu.dimension_semantics<parallel>], iteration_bounds = array<i64: 2, 1>, scalar_prefetch = 1 : i64, scratch_operands = 0 : i64, tpu.core_type = #tpu.core_type<tc>, window_params = [{transform_indices = @transform_0, window_bounds = array<i64: 1, 16, 768>}, {pipeline_mode = #tpu.pipeline_mode<synchronous>, transform_indices = @transform_1, window_bounds = array<i64: 16, 128>}, {transform_indices = @transform_2, window_bounds = array<i64: 1, 16, 1664>}]} {
    %c16_i32 = arith.constant 16 : i32
    %0 = arith.muli %arg0, %c16_i32 : i32
    %c16_i32_0 = arith.constant 16 : i32
    %1 = arith.muli %arg1, %c16_i32_0 : i32
    %2 = arith.addi %0, %1 : i32
    %c2_i32 = arith.constant 2 : i32
    %3 = arith.muli %2, %c2_i32 : i32
    %c0_i32 = arith.constant 0 : i32
    %c8_i32 = arith.constant 8 : i32
    %4 = arith.muli %c0_i32, %c8_i32 : i32
    %5 = tpu.assume_multiple %4, 8 : i32
    %c0_i32_1 = arith.constant 0 : i32
    %6 = arith.addi %5, %c0_i32_1 : i32
    %c2_i32_2 = arith.constant 2 : i32
    %7 = arith.muli %6, %c2_i32_2 : i32
    %8 = arith.addi %3, %7 : i32
    %9 = arith.index_cast %8 : i32 to index
    %10 = memref.load %arg2[%9] : memref<64xi32, #tpu.memory_space<smem>>
    %c1_i32 = arith.constant 1 : i32
    %11 = arith.addi %8, %c1_i32 : i32
    %12 = arith.index_cast %11 : i32 to index
    %13 = memref.load %arg2[%12] : memref<64xi32, #tpu.memory_space<smem>>
    %c0_i32_3 = arith.constant 0 : i32
    %c15_i32 = arith.constant 15 : i32
    %14 = arith.maxsi %c0_i32_3, %10 : i32
    %15 = arith.minsi %c15_i32, %14 : i32
    %c0_i32_4 = arith.constant 0 : i32
    %c15_i32_5 = arith.constant 15 : i32
    %16 = arith.maxsi %c0_i32_4, %13 : i32
    %17 = arith.minsi %c15_i32_5, %16 : i32
    %18 = arith.subi %17, %15 : i32
    %c0_i32_6 = arith.constant 0 : i32
    %c15_i32_7 = arith.constant 15 : i32
    %19 = arith.maxsi %c0_i32_6, %18 : i32
    %20 = arith.minsi %c15_i32_7, %19 : i32
    %c0 = arith.constant 0 : index
    %21 = arith.index_cast %15 : i32 to index
    %c0_8 = arith.constant 0 : index
    %22 = vector.load %arg3[%c0, %21, %c0_8] : memref<1x16x768xf32, #tpu.memory_space<vmem>>, vector<1x1x768xf32>
    %23 = vector.shape_cast %22 : vector<1x1x768xf32> to vector<1x768xf32>
    %c0_9 = arith.constant 0 : index
    %24 = arith.index_cast %17 : i32 to index
    %c0_10 = arith.constant 0 : index
    %25 = vector.load %arg3[%c0_9, %24, %c0_10] : memref<1x16x768xf32, #tpu.memory_space<vmem>>, vector<1x1x768xf32>
    %26 = vector.shape_cast %25 : vector<1x1x768xf32> to vector<1x768xf32>
    %27 = arith.index_cast %20 : i32 to index
    %c0_11 = arith.constant 0 : index
    %28 = vector.load %arg4[%27, %c0_11] : memref<16x128xf32, #tpu.memory_space<vmem>>, vector<1x128xf32>
    %c1_i32_12 = arith.constant 1 : i32
    %29 = arith.addi %5, %c1_i32_12 : i32
    %c2_i32_13 = arith.constant 2 : i32
    %30 = arith.muli %29, %c2_i32_13 : i32
    %31 = arith.addi %3, %30 : i32
    %32 = arith.index_cast %31 : i32 to index
    %33 = memref.load %arg2[%32] : memref<64xi32, #tpu.memory_space<smem>>
    %c1_i32_14 = arith.constant 1 : i32
    %34 = arith.addi %31, %c1_i32_14 : i32
    %35 = arith.index_cast %34 : i32 to index
    %36 = memref.load %arg2[%35] : memref<64xi32, #tpu.memory_space<smem>>
    %c0_i32_15 = arith.constant 0 : i32
    %c15_i32_16 = arith.constant 15 : i32
    %37 = arith.maxsi %c0_i32_15, %33 : i32
    %38 = arith.minsi %c15_i32_16, %37 : i32
    %c0_i32_17 = arith.constant 0 : i32
    %c15_i32_18 = arith.constant 15 : i32
    %39 = arith.maxsi %c0_i32_17, %36 : i32
    %40 = arith.minsi %c15_i32_18, %39 : i32
    %41 = arith.subi %40, %38 : i32
    %c0_i32_19 = arith.constant 0 : i32
    %c15_i32_20 = arith.constant 15 : i32
    %42 = arith.maxsi %c0_i32_19, %41 : i32
    %43 = arith.minsi %c15_i32_20, %42 : i32
    %c0_21 = arith.constant 0 : index
    %44 = arith.index_cast %38 : i32 to index
    %c0_22 = arith.constant 0 : index
    %45 = vector.load %arg3[%c0_21, %44, %c0_22] : memref<1x16x768xf32, #tpu.memory_space<vmem>>, vector<1x1x768xf32>
    %46 = vector.shape_cast %45 : vector<1x1x768xf32> to vector<1x768xf32>
    %c0_23 = arith.constant 0 : index
    %47 = arith.index_cast %40 : i32 to index
    %c0_24 = arith.constant 0 : index
    %48 = vector.load %arg3[%c0_23, %47, %c0_24] : memref<1x16x768xf32, #tpu.memory_space<vmem>>, vector<1x1x768xf32>
    %49 = vector.shape_cast %48 : vector<1x1x768xf32> to vector<1x768xf32>
    %50 = arith.index_cast %43 : i32 to index
    %c0_25 = arith.constant 0 : index
    %51 = vector.load %arg4[%50, %c0_25] : memref<16x128xf32, #tpu.memory_space<vmem>>, vector<1x128xf32>
    %c2_i32_26 = arith.constant 2 : i32
    %52 = arith.addi %5, %c2_i32_26 : i32
    %c2_i32_27 = arith.constant 2 : i32
    %53 = arith.muli %52, %c2_i32_27 : i32
    %54 = arith.addi %3, %53 : i32
    %55 = arith.index_cast %54 : i32 to index
    %56 = memref.load %arg2[%55] : memref<64xi32, #tpu.memory_space<smem>>
    %c1_i32_28 = arith.constant 1 : i32
    %57 = arith.addi %54, %c1_i32_28 : i32
    %58 = arith.index_cast %57 : i32 to index
    %59 = memref.load %arg2[%58] : memref<64xi32, #tpu.memory_space<smem>>
    %c0_i32_29 = arith.constant 0 : i32
    %c15_i32_30 = arith.constant 15 : i32
    %60 = arith.maxsi %c0_i32_29, %56 : i32
    %61 = arith.minsi %c15_i32_30, %60 : i32
    %c0_i32_31 = arith.constant 0 : i32
    %c15_i32_32 = arith.constant 15 : i32
    %62 = arith.maxsi %c0_i32_31, %59 : i32
    %63 = arith.minsi %c15_i32_32, %62 : i32
    %64 = arith.subi %63, %61 : i32
    %c0_i32_33 = arith.constant 0 : i32
    %c15_i32_34 = arith.constant 15 : i32
    %65 = arith.maxsi %c0_i32_33, %64 : i32
    %66 = arith.minsi %c15_i32_34, %65 : i32
    %c0_35 = arith.constant 0 : index
    %67 = arith.index_cast %61 : i32 to index
    %c0_36 = arith.constant 0 : index
    %68 = vector.load %arg3[%c0_35, %67, %c0_36] : memref<1x16x768xf32, #tpu.memory_space<vmem>>, vector<1x1x768xf32>
    %69 = vector.shape_cast %68 : vector<1x1x768xf32> to vector<1x768xf32>
    %c0_37 = arith.constant 0 : index
    %70 = arith.index_cast %63 : i32 to index
    %c0_38 = arith.constant 0 : index
    %71 = vector.load %arg3[%c0_37, %70, %c0_38] : memref<1x16x768xf32, #tpu.memory_space<vmem>>, vector<1x1x768xf32>
    %72 = vector.shape_cast %71 : vector<1x1x768xf32> to vector<1x768xf32>
    %73 = arith.index_cast %66 : i32 to index
    %c0_39 = arith.constant 0 : index
    %74 = vector.load %arg4[%73, %c0_39] : memref<16x128xf32, #tpu.memory_space<vmem>>, vector<1x128xf32>
    %c3_i32 = arith.constant 3 : i32
    %75 = arith.addi %5, %c3_i32 : i32
    %c2_i32_40 = arith.constant 2 : i32
    %76 = arith.muli %75, %c2_i32_40 : i32
    %77 = arith.addi %3, %76 : i32
    %78 = arith.index_cast %77 : i32 to index
    %79 = memref.load %arg2[%78] : memref<64xi32, #tpu.memory_space<smem>>
    %c1_i32_41 = arith.constant 1 : i32
    %80 = arith.addi %77, %c1_i32_41 : i32
    %81 = arith.index_cast %80 : i32 to index
    %82 = memref.load %arg2[%81] : memref<64xi32, #tpu.memory_space<smem>>
    %c0_i32_42 = arith.constant 0 : i32
    %c15_i32_43 = arith.constant 15 : i32
    %83 = arith.maxsi %c0_i32_42, %79 : i32
    %84 = arith.minsi %c15_i32_43, %83 : i32
    %c0_i32_44 = arith.constant 0 : i32
    %c15_i32_45 = arith.constant 15 : i32
    %85 = arith.maxsi %c0_i32_44, %82 : i32
    %86 = arith.minsi %c15_i32_45, %85 : i32
    %87 = arith.subi %86, %84 : i32
    %c0_i32_46 = arith.constant 0 : i32
    %c15_i32_47 = arith.constant 15 : i32
    %88 = arith.maxsi %c0_i32_46, %87 : i32
    %89 = arith.minsi %c15_i32_47, %88 : i32
    %c0_48 = arith.constant 0 : index
    %90 = arith.index_cast %84 : i32 to index
    %c0_49 = arith.constant 0 : index
    %91 = vector.load %arg3[%c0_48, %90, %c0_49] : memref<1x16x768xf32, #tpu.memory_space<vmem>>, vector<1x1x768xf32>
    %92 = vector.shape_cast %91 : vector<1x1x768xf32> to vector<1x768xf32>
    %c0_50 = arith.constant 0 : index
    %93 = arith.index_cast %86 : i32 to index
    %c0_51 = arith.constant 0 : index
    %94 = vector.load %arg3[%c0_50, %93, %c0_51] : memref<1x16x768xf32, #tpu.memory_space<vmem>>, vector<1x1x768xf32>
    %95 = vector.shape_cast %94 : vector<1x1x768xf32> to vector<1x768xf32>
    %96 = arith.index_cast %89 : i32 to index
    %c0_52 = arith.constant 0 : index
    %97 = vector.load %arg4[%96, %c0_52] : memref<16x128xf32, #tpu.memory_space<vmem>>, vector<1x128xf32>
    %c4_i32 = arith.constant 4 : i32
    %98 = arith.addi %5, %c4_i32 : i32
    %c2_i32_53 = arith.constant 2 : i32
    %99 = arith.muli %98, %c2_i32_53 : i32
    %100 = arith.addi %3, %99 : i32
    %101 = arith.index_cast %100 : i32 to index
    %102 = memref.load %arg2[%101] : memref<64xi32, #tpu.memory_space<smem>>
    %c1_i32_54 = arith.constant 1 : i32
    %103 = arith.addi %100, %c1_i32_54 : i32
    %104 = arith.index_cast %103 : i32 to index
    %105 = memref.load %arg2[%104] : memref<64xi32, #tpu.memory_space<smem>>
    %c0_i32_55 = arith.constant 0 : i32
    %c15_i32_56 = arith.constant 15 : i32
    %106 = arith.maxsi %c0_i32_55, %102 : i32
    %107 = arith.minsi %c15_i32_56, %106 : i32
    %c0_i32_57 = arith.constant 0 : i32
    %c15_i32_58 = arith.constant 15 : i32
    %108 = arith.maxsi %c0_i32_57, %105 : i32
    %109 = arith.minsi %c15_i32_58, %108 : i32
    %110 = arith.subi %109, %107 : i32
    %c0_i32_59 = arith.constant 0 : i32
    %c15_i32_60 = arith.constant 15 : i32
    %111 = arith.maxsi %c0_i32_59, %110 : i32
    %112 = arith.minsi %c15_i32_60, %111 : i32
    %c0_61 = arith.constant 0 : index
    %113 = arith.index_cast %107 : i32 to index
    %c0_62 = arith.constant 0 : index
    %114 = vector.load %arg3[%c0_61, %113, %c0_62] : memref<1x16x768xf32, #tpu.memory_space<vmem>>, vector<1x1x768xf32>
    %115 = vector.shape_cast %114 : vector<1x1x768xf32> to vector<1x768xf32>
    %c0_63 = arith.constant 0 : index
    %116 = arith.index_cast %109 : i32 to index
    %c0_64 = arith.constant 0 : index
    %117 = vector.load %arg3[%c0_63, %116, %c0_64] : memref<1x16x768xf32, #tpu.memory_space<vmem>>, vector<1x1x768xf32>
    %118 = vector.shape_cast %117 : vector<1x1x768xf32> to vector<1x768xf32>
    %119 = arith.index_cast %112 : i32 to index
    %c0_65 = arith.constant 0 : index
    %120 = vector.load %arg4[%119, %c0_65] : memref<16x128xf32, #tpu.memory_space<vmem>>, vector<1x128xf32>
    %c5_i32 = arith.constant 5 : i32
    %121 = arith.addi %5, %c5_i32 : i32
    %c2_i32_66 = arith.constant 2 : i32
    %122 = arith.muli %121, %c2_i32_66 : i32
    %123 = arith.addi %3, %122 : i32
    %124 = arith.index_cast %123 : i32 to index
    %125 = memref.load %arg2[%124] : memref<64xi32, #tpu.memory_space<smem>>
    %c1_i32_67 = arith.constant 1 : i32
    %126 = arith.addi %123, %c1_i32_67 : i32
    %127 = arith.index_cast %126 : i32 to index
    %128 = memref.load %arg2[%127] : memref<64xi32, #tpu.memory_space<smem>>
    %c0_i32_68 = arith.constant 0 : i32
    %c15_i32_69 = arith.constant 15 : i32
    %129 = arith.maxsi %c0_i32_68, %125 : i32
    %130 = arith.minsi %c15_i32_69, %129 : i32
    %c0_i32_70 = arith.constant 0 : i32
    %c15_i32_71 = arith.constant 15 : i32
    %131 = arith.maxsi %c0_i32_70, %128 : i32
    %132 = arith.minsi %c15_i32_71, %131 : i32
    %133 = arith.subi %132, %130 : i32
    %c0_i32_72 = arith.constant 0 : i32
    %c15_i32_73 = arith.constant 15 : i32
    %134 = arith.maxsi %c0_i32_72, %133 : i32
    %135 = arith.minsi %c15_i32_73, %134 : i32
    %c0_74 = arith.constant 0 : index
    %136 = arith.index_cast %130 : i32 to index
    %c0_75 = arith.constant 0 : index
    %137 = vector.load %arg3[%c0_74, %136, %c0_75] : memref<1x16x768xf32, #tpu.memory_space<vmem>>, vector<1x1x768xf32>
    %138 = vector.shape_cast %137 : vector<1x1x768xf32> to vector<1x768xf32>
    %c0_76 = arith.constant 0 : index
    %139 = arith.index_cast %132 : i32 to index
    %c0_77 = arith.constant 0 : index
    %140 = vector.load %arg3[%c0_76, %139, %c0_77] : memref<1x16x768xf32, #tpu.memory_space<vmem>>, vector<1x1x768xf32>
    %141 = vector.shape_cast %140 : vector<1x1x768xf32> to vector<1x768xf32>
    %142 = arith.index_cast %135 : i32 to index
    %c0_78 = arith.constant 0 : index
    %143 = vector.load %arg4[%142, %c0_78] : memref<16x128xf32, #tpu.memory_space<vmem>>, vector<1x128xf32>
    %c6_i32 = arith.constant 6 : i32
    %144 = arith.addi %5, %c6_i32 : i32
    %c2_i32_79 = arith.constant 2 : i32
    %145 = arith.muli %144, %c2_i32_79 : i32
    %146 = arith.addi %3, %145 : i32
    %147 = arith.index_cast %146 : i32 to index
    %148 = memref.load %arg2[%147] : memref<64xi32, #tpu.memory_space<smem>>
    %c1_i32_80 = arith.constant 1 : i32
    %149 = arith.addi %146, %c1_i32_80 : i32
    %150 = arith.index_cast %149 : i32 to index
    %151 = memref.load %arg2[%150] : memref<64xi32, #tpu.memory_space<smem>>
    %c0_i32_81 = arith.constant 0 : i32
    %c15_i32_82 = arith.constant 15 : i32
    %152 = arith.maxsi %c0_i32_81, %148 : i32
    %153 = arith.minsi %c15_i32_82, %152 : i32
    %c0_i32_83 = arith.constant 0 : i32
    %c15_i32_84 = arith.constant 15 : i32
    %154 = arith.maxsi %c0_i32_83, %151 : i32
    %155 = arith.minsi %c15_i32_84, %154 : i32
    %156 = arith.subi %155, %153 : i32
    %c0_i32_85 = arith.constant 0 : i32
    %c15_i32_86 = arith.constant 15 : i32
    %157 = arith.maxsi %c0_i32_85, %156 : i32
    %158 = arith.minsi %c15_i32_86, %157 : i32
    %c0_87 = arith.constant 0 : index
    %159 = arith.index_cast %153 : i32 to index
    %c0_88 = arith.constant 0 : index
    %160 = vector.load %arg3[%c0_87, %159, %c0_88] : memref<1x16x768xf32, #tpu.memory_space<vmem>>, vector<1x1x768xf32>
    %161 = vector.shape_cast %160 : vector<1x1x768xf32> to vector<1x768xf32>
    %c0_89 = arith.constant 0 : index
    %162 = arith.index_cast %155 : i32 to index
    %c0_90 = arith.constant 0 : index
    %163 = vector.load %arg3[%c0_89, %162, %c0_90] : memref<1x16x768xf32, #tpu.memory_space<vmem>>, vector<1x1x768xf32>
    %164 = vector.shape_cast %163 : vector<1x1x768xf32> to vector<1x768xf32>
    %165 = arith.index_cast %158 : i32 to index
    %c0_91 = arith.constant 0 : index
    %166 = vector.load %arg4[%165, %c0_91] : memref<16x128xf32, #tpu.memory_space<vmem>>, vector<1x128xf32>
    %c7_i32 = arith.constant 7 : i32
    %167 = arith.addi %5, %c7_i32 : i32
    %c2_i32_92 = arith.constant 2 : i32
    %168 = arith.muli %167, %c2_i32_92 : i32
    %169 = arith.addi %3, %168 : i32
    %170 = arith.index_cast %169 : i32 to index
    %171 = memref.load %arg2[%170] : memref<64xi32, #tpu.memory_space<smem>>
    %c1_i32_93 = arith.constant 1 : i32
    %172 = arith.addi %169, %c1_i32_93 : i32
    %173 = arith.index_cast %172 : i32 to index
    %174 = memref.load %arg2[%173] : memref<64xi32, #tpu.memory_space<smem>>
    %c0_i32_94 = arith.constant 0 : i32
    %c15_i32_95 = arith.constant 15 : i32
    %175 = arith.maxsi %c0_i32_94, %171 : i32
    %176 = arith.minsi %c15_i32_95, %175 : i32
    %c0_i32_96 = arith.constant 0 : i32
    %c15_i32_97 = arith.constant 15 : i32
    %177 = arith.maxsi %c0_i32_96, %174 : i32
    %178 = arith.minsi %c15_i32_97, %177 : i32
    %179 = arith.subi %178, %176 : i32
    %c0_i32_98 = arith.constant 0 : i32
    %c15_i32_99 = arith.constant 15 : i32
    %180 = arith.maxsi %c0_i32_98, %179 : i32
    %181 = arith.minsi %c15_i32_99, %180 : i32
    %c0_100 = arith.constant 0 : index
    %182 = arith.index_cast %176 : i32 to index
    %c0_101 = arith.constant 0 : index
    %183 = vector.load %arg3[%c0_100, %182, %c0_101] : memref<1x16x768xf32, #tpu.memory_space<vmem>>, vector<1x1x768xf32>
    %184 = vector.shape_cast %183 : vector<1x1x768xf32> to vector<1x768xf32>
    %c0_102 = arith.constant 0 : index
    %185 = arith.index_cast %178 : i32 to index
    %c0_103 = arith.constant 0 : index
    %186 = vector.load %arg3[%c0_102, %185, %c0_103] : memref<1x16x768xf32, #tpu.memory_space<vmem>>, vector<1x1x768xf32>
    %187 = vector.shape_cast %186 : vector<1x1x768xf32> to vector<1x768xf32>
    %188 = arith.index_cast %181 : i32 to index
    %c0_104 = arith.constant 0 : index
    %189 = vector.load %arg4[%188, %c0_104] : memref<16x128xf32, #tpu.memory_space<vmem>>, vector<1x128xf32>
    %190 = tpu.concatenate %23, %46, %69, %92, %115, %138, %161, %184 in 0 : vector<1x768xf32>, vector<1x768xf32>, vector<1x768xf32>, vector<1x768xf32>, vector<1x768xf32>, vector<1x768xf32>, vector<1x768xf32>, vector<1x768xf32> -> vector<8x768xf32>
    %c0_105 = arith.constant 0 : index
    %191 = arith.index_cast %5 : i32 to index
    %c0_106 = arith.constant 0 : index
    %192 = vector.load %arg5[%c0_105, %191, %c0_106] : memref<1x16x1664xf32, #tpu.memory_space<vmem>>, vector<1x8x768xf32>
    %193 = vector.shape_cast %192 : vector<1x8x768xf32> to vector<8x768xf32>
    %194 = vector.shape_cast %190 : vector<8x768xf32> to vector<1x8x768xf32>
    tpu.vector_store %arg5[%c0_105, %191, %c0_106], %194 {strides = array<i32>} : memref<1x16x1664xf32, #tpu.memory_space<vmem>>, vector<1x8x768xf32>,
    %195 = tpu.concatenate %26, %49, %72, %95, %118, %141, %164, %187 in 0 : vector<1x768xf32>, vector<1x768xf32>, vector<1x768xf32>, vector<1x768xf32>, vector<1x768xf32>, vector<1x768xf32>, vector<1x768xf32>, vector<1x768xf32> -> vector<8x768xf32>
    %c0_107 = arith.constant 0 : index
    %196 = arith.index_cast %5 : i32 to index
    %c768 = arith.constant 768 : index
    %197 = vector.load %arg5[%c0_107, %196, %c768] : memref<1x16x1664xf32, #tpu.memory_space<vmem>>, vector<1x8x768xf32>
    %198 = vector.shape_cast %197 : vector<1x8x768xf32> to vector<8x768xf32>
    %199 = vector.shape_cast %195 : vector<8x768xf32> to vector<1x8x768xf32>
    tpu.vector_store %arg5[%c0_107, %196, %c768], %199 {strides = array<i32>} : memref<1x16x1664xf32, #tpu.memory_space<vmem>>, vector<1x8x768xf32>,
    %200 = tpu.concatenate %28, %51, %74, %97, %120, %143, %166, %189 in 0 : vector<1x128xf32>, vector<1x128xf32>, vector<1x128xf32>, vector<1x128xf32>, vector<1x128xf32>, vector<1x128xf32>, vector<1x128xf32>, vector<1x128xf32> -> vector<8x128xf32>
    %c0_108 = arith.constant 0 : index
    %201 = arith.index_cast %5 : i32 to index
    %c1536 = arith.constant 1536 : index
    %202 = vector.load %arg5[%c0_108, %201, %c1536] : memref<1x16x1664xf32, #tpu.memory_space<vmem>>, vector<1x8x128xf32>
    %203 = vector.shape_cast %202 : vector<1x8x128xf32> to vector<8x128xf32>
    %204 = vector.shape_cast %200 : vector<8x128xf32> to vector<1x8x128xf32>
    tpu.vector_store %arg5[%c0_108, %201, %c1536], %204 {strides = array<i32>} : memref<1x16x1664xf32, #tpu.memory_space<vmem>>, vector<1x8x128xf32>,
    %c1_i32_109 = arith.constant 1 : i32
    %c8_i32_110 = arith.constant 8 : i32
    %205 = arith.muli %c1_i32_109, %c8_i32_110 : i32
    %206 = tpu.assume_multiple %205, 8 : i32
    %c0_i32_111 = arith.constant 0 : i32
    %207 = arith.addi %206, %c0_i32_111 : i32
    %c2_i32_112 = arith.constant 2 : i32
    %208 = arith.muli %207, %c2_i32_112 : i32
    %209 = arith.addi %3, %208 : i32
    %210 = arith.index_cast %209 : i32 to index
    %211 = memref.load %arg2[%210] : memref<64xi32, #tpu.memory_space<smem>>
    %c1_i32_113 = arith.constant 1 : i32
    %212 = arith.addi %209, %c1_i32_113 : i32
    %213 = arith.index_cast %212 : i32 to index
    %214 = memref.load %arg2[%213] : memref<64xi32, #tpu.memory_space<smem>>
    %c0_i32_114 = arith.constant 0 : i32
    %c15_i32_115 = arith.constant 15 : i32
    %215 = arith.maxsi %c0_i32_114, %211 : i32
    %216 = arith.minsi %c15_i32_115, %215 : i32
    %c0_i32_116 = arith.constant 0 : i32
    %c15_i32_117 = arith.constant 15 : i32
    %217 = arith.maxsi %c0_i32_116, %214 : i32
    %218 = arith.minsi %c15_i32_117, %217 : i32
    %219 = arith.subi %218, %216 : i32
    %c0_i32_118 = arith.constant 0 : i32
    %c15_i32_119 = arith.constant 15 : i32
    %220 = arith.maxsi %c0_i32_118, %219 : i32
    %221 = arith.minsi %c15_i32_119, %220 : i32
    %c0_120 = arith.constant 0 : index
    %222 = arith.index_cast %216 : i32 to index
    %c0_121 = arith.constant 0 : index
    %223 = vector.load %arg3[%c0_120, %222, %c0_121] : memref<1x16x768xf32, #tpu.memory_space<vmem>>, vector<1x1x768xf32>
    %224 = vector.shape_cast %223 : vector<1x1x768xf32> to vector<1x768xf32>
    %c0_122 = arith.constant 0 : index
    %225 = arith.index_cast %218 : i32 to index
    %c0_123 = arith.constant 0 : index
    %226 = vector.load %arg3[%c0_122, %225, %c0_123] : memref<1x16x768xf32, #tpu.memory_space<vmem>>, vector<1x1x768xf32>
    %227 = vector.shape_cast %226 : vector<1x1x768xf32> to vector<1x768xf32>
    %228 = arith.index_cast %221 : i32 to index
    %c0_124 = arith.constant 0 : index
    %229 = vector.load %arg4[%228, %c0_124] : memref<16x128xf32, #tpu.memory_space<vmem>>, vector<1x128xf32>
    %c1_i32_125 = arith.constant 1 : i32
    %230 = arith.addi %206, %c1_i32_125 : i32
    %c2_i32_126 = arith.constant 2 : i32
    %231 = arith.muli %230, %c2_i32_126 : i32
    %232 = arith.addi %3, %231 : i32
    %233 = arith.index_cast %232 : i32 to index
    %234 = memref.load %arg2[%233] : memref<64xi32, #tpu.memory_space<smem>>
    %c1_i32_127 = arith.constant 1 : i32
    %235 = arith.addi %232, %c1_i32_127 : i32
    %236 = arith.index_cast %235 : i32 to index
    %237 = memref.load %arg2[%236] : memref<64xi32, #tpu.memory_space<smem>>
    %c0_i32_128 = arith.constant 0 : i32
    %c15_i32_129 = arith.constant 15 : i32
    %238 = arith.maxsi %c0_i32_128, %234 : i32
    %239 = arith.minsi %c15_i32_129, %238 : i32
    %c0_i32_130 = arith.constant 0 : i32
    %c15_i32_131 = arith.constant 15 : i32
    %240 = arith.maxsi %c0_i32_130, %237 : i32
    %241 = arith.minsi %c15_i32_131, %240 : i32
    %242 = arith.subi %241, %239 : i32
    %c0_i32_132 = arith.constant 0 : i32
    %c15_i32_133 = arith.constant 15 : i32
    %243 = arith.maxsi %c0_i32_132, %242 : i32
    %244 = arith.minsi %c15_i32_133, %243 : i32
    %c0_134 = arith.constant 0 : index
    %245 = arith.index_cast %239 : i32 to index
    %c0_135 = arith.constant 0 : index
    %246 = vector.load %arg3[%c0_134, %245, %c0_135] : memref<1x16x768xf32, #tpu.memory_space<vmem>>, vector<1x1x768xf32>
    %247 = vector.shape_cast %246 : vector<1x1x768xf32> to vector<1x768xf32>
    %c0_136 = arith.constant 0 : index
    %248 = arith.index_cast %241 : i32 to index
    %c0_137 = arith.constant 0 : index
    %249 = vector.load %arg3[%c0_136, %248, %c0_137] : memref<1x16x768xf32, #tpu.memory_space<vmem>>, vector<1x1x768xf32>
    %250 = vector.shape_cast %249 : vector<1x1x768xf32> to vector<1x768xf32>
    %251 = arith.index_cast %244 : i32 to index
    %c0_138 = arith.constant 0 : index
    %252 = vector.load %arg4[%251, %c0_138] : memref<16x128xf32, #tpu.memory_space<vmem>>, vector<1x128xf32>
    %c2_i32_139 = arith.constant 2 : i32
    %253 = arith.addi %206, %c2_i32_139 : i32
    %c2_i32_140 = arith.constant 2 : i32
    %254 = arith.muli %253, %c2_i32_140 : i32
    %255 = arith.addi %3, %254 : i32
    %256 = arith.index_cast %255 : i32 to index
    %257 = memref.load %arg2[%256] : memref<64xi32, #tpu.memory_space<smem>>
    %c1_i32_141 = arith.constant 1 : i32
    %258 = arith.addi %255, %c1_i32_141 : i32
    %259 = arith.index_cast %258 : i32 to index
    %260 = memref.load %arg2[%259] : memref<64xi32, #tpu.memory_space<smem>>
    %c0_i32_142 = arith.constant 0 : i32
    %c15_i32_143 = arith.constant 15 : i32
    %261 = arith.maxsi %c0_i32_142, %257 : i32
    %262 = arith.minsi %c15_i32_143, %261 : i32
    %c0_i32_144 = arith.constant 0 : i32
    %c15_i32_145 = arith.constant 15 : i32
    %263 = arith.maxsi %c0_i32_144, %260 : i32
    %264 = arith.minsi %c15_i32_145, %263 : i32
    %265 = arith.subi %264, %262 : i32
    %c0_i32_146 = arith.constant 0 : i32
    %c15_i32_147 = arith.constant 15 : i32
    %266 = arith.maxsi %c0_i32_146, %265 : i32
    %267 = arith.minsi %c15_i32_147, %266 : i32
    %c0_148 = arith.constant 0 : index
    %268 = arith.index_cast %262 : i32 to index
    %c0_149 = arith.constant 0 : index
    %269 = vector.load %arg3[%c0_148, %268, %c0_149] : memref<1x16x768xf32, #tpu.memory_space<vmem>>, vector<1x1x768xf32>
    %270 = vector.shape_cast %269 : vector<1x1x768xf32> to vector<1x768xf32>
    %c0_150 = arith.constant 0 : index
    %271 = arith.index_cast %264 : i32 to index
    %c0_151 = arith.constant 0 : index
    %272 = vector.load %arg3[%c0_150, %271, %c0_151] : memref<1x16x768xf32, #tpu.memory_space<vmem>>, vector<1x1x768xf32>
    %273 = vector.shape_cast %272 : vector<1x1x768xf32> to vector<1x768xf32>
    %274 = arith.index_cast %267 : i32 to index
    %c0_152 = arith.constant 0 : index
    %275 = vector.load %arg4[%274, %c0_152] : memref<16x128xf32, #tpu.memory_space<vmem>>, vector<1x128xf32>
    %c3_i32_153 = arith.constant 3 : i32
    %276 = arith.addi %206, %c3_i32_153 : i32
    %c2_i32_154 = arith.constant 2 : i32
    %277 = arith.muli %276, %c2_i32_154 : i32
    %278 = arith.addi %3, %277 : i32
    %279 = arith.index_cast %278 : i32 to index
    %280 = memref.load %arg2[%279] : memref<64xi32, #tpu.memory_space<smem>>
    %c1_i32_155 = arith.constant 1 : i32
    %281 = arith.addi %278, %c1_i32_155 : i32
    %282 = arith.index_cast %281 : i32 to index
    %283 = memref.load %arg2[%282] : memref<64xi32, #tpu.memory_space<smem>>
    %c0_i32_156 = arith.constant 0 : i32
    %c15_i32_157 = arith.constant 15 : i32
    %284 = arith.maxsi %c0_i32_156, %280 : i32
    %285 = arith.minsi %c15_i32_157, %284 : i32
    %c0_i32_158 = arith.constant 0 : i32
    %c15_i32_159 = arith.constant 15 : i32
    %286 = arith.maxsi %c0_i32_158, %283 : i32
    %287 = arith.minsi %c15_i32_159, %286 : i32
    %288 = arith.subi %287, %285 : i32
    %c0_i32_160 = arith.constant 0 : i32
    %c15_i32_161 = arith.constant 15 : i32
    %289 = arith.maxsi %c0_i32_160, %288 : i32
    %290 = arith.minsi %c15_i32_161, %289 : i32
    %c0_162 = arith.constant 0 : index
    %291 = arith.index_cast %285 : i32 to index
    %c0_163 = arith.constant 0 : index
    %292 = vector.load %arg3[%c0_162, %291, %c0_163] : memref<1x16x768xf32, #tpu.memory_space<vmem>>, vector<1x1x768xf32>
    %293 = vector.shape_cast %292 : vector<1x1x768xf32> to vector<1x768xf32>
    %c0_164 = arith.constant 0 : index
    %294 = arith.index_cast %287 : i32 to index
    %c0_165 = arith.constant 0 : index
    %295 = vector.load %arg3[%c0_164, %294, %c0_165] : memref<1x16x768xf32, #tpu.memory_space<vmem>>, vector<1x1x768xf32>
    %296 = vector.shape_cast %295 : vector<1x1x768xf32> to vector<1x768xf32>
    %297 = arith.index_cast %290 : i32 to index
    %c0_166 = arith.constant 0 : index
    %298 = vector.load %arg4[%297, %c0_166] : memref<16x128xf32, #tpu.memory_space<vmem>>, vector<1x128xf32>
    %c4_i32_167 = arith.constant 4 : i32
    %299 = arith.addi %206, %c4_i32_167 : i32
    %c2_i32_168 = arith.constant 2 : i32
    %300 = arith.muli %299, %c2_i32_168 : i32
    %301 = arith.addi %3, %300 : i32
    %302 = arith.index_cast %301 : i32 to index
    %303 = memref.load %arg2[%302] : memref<64xi32, #tpu.memory_space<smem>>
    %c1_i32_169 = arith.constant 1 : i32
    %304 = arith.addi %301, %c1_i32_169 : i32
    %305 = arith.index_cast %304 : i32 to index
    %306 = memref.load %arg2[%305] : memref<64xi32, #tpu.memory_space<smem>>
    %c0_i32_170 = arith.constant 0 : i32
    %c15_i32_171 = arith.constant 15 : i32
    %307 = arith.maxsi %c0_i32_170, %303 : i32
    %308 = arith.minsi %c15_i32_171, %307 : i32
    %c0_i32_172 = arith.constant 0 : i32
    %c15_i32_173 = arith.constant 15 : i32
    %309 = arith.maxsi %c0_i32_172, %306 : i32
    %310 = arith.minsi %c15_i32_173, %309 : i32
    %311 = arith.subi %310, %308 : i32
    %c0_i32_174 = arith.constant 0 : i32
    %c15_i32_175 = arith.constant 15 : i32
    %312 = arith.maxsi %c0_i32_174, %311 : i32
    %313 = arith.minsi %c15_i32_175, %312 : i32
    %c0_176 = arith.constant 0 : index
    %314 = arith.index_cast %308 : i32 to index
    %c0_177 = arith.constant 0 : index
    %315 = vector.load %arg3[%c0_176, %314, %c0_177] : memref<1x16x768xf32, #tpu.memory_space<vmem>>, vector<1x1x768xf32>
    %316 = vector.shape_cast %315 : vector<1x1x768xf32> to vector<1x768xf32>
    %c0_178 = arith.constant 0 : index
    %317 = arith.index_cast %310 : i32 to index
    %c0_179 = arith.constant 0 : index
    %318 = vector.load %arg3[%c0_178, %317, %c0_179] : memref<1x16x768xf32, #tpu.memory_space<vmem>>, vector<1x1x768xf32>
    %319 = vector.shape_cast %318 : vector<1x1x768xf32> to vector<1x768xf32>
    %320 = arith.index_cast %313 : i32 to index
    %c0_180 = arith.constant 0 : index
    %321 = vector.load %arg4[%320, %c0_180] : memref<16x128xf32, #tpu.memory_space<vmem>>, vector<1x128xf32>
    %c5_i32_181 = arith.constant 5 : i32
    %322 = arith.addi %206, %c5_i32_181 : i32
    %c2_i32_182 = arith.constant 2 : i32
    %323 = arith.muli %322, %c2_i32_182 : i32
    %324 = arith.addi %3, %323 : i32
    %325 = arith.index_cast %324 : i32 to index
    %326 = memref.load %arg2[%325] : memref<64xi32, #tpu.memory_space<smem>>
    %c1_i32_183 = arith.constant 1 : i32
    %327 = arith.addi %324, %c1_i32_183 : i32
    %328 = arith.index_cast %327 : i32 to index
    %329 = memref.load %arg2[%328] : memref<64xi32, #tpu.memory_space<smem>>
    %c0_i32_184 = arith.constant 0 : i32
    %c15_i32_185 = arith.constant 15 : i32
    %330 = arith.maxsi %c0_i32_184, %326 : i32
    %331 = arith.minsi %c15_i32_185, %330 : i32
    %c0_i32_186 = arith.constant 0 : i32
    %c15_i32_187 = arith.constant 15 : i32
    %332 = arith.maxsi %c0_i32_186, %329 : i32
    %333 = arith.minsi %c15_i32_187, %332 : i32
    %334 = arith.subi %333, %331 : i32
    %c0_i32_188 = arith.constant 0 : i32
    %c15_i32_189 = arith.constant 15 : i32
    %335 = arith.maxsi %c0_i32_188, %334 : i32
    %336 = arith.minsi %c15_i32_189, %335 : i32
    %c0_190 = arith.constant 0 : index
    %337 = arith.index_cast %331 : i32 to index
    %c0_191 = arith.constant 0 : index
    %338 = vector.load %arg3[%c0_190, %337, %c0_191] : memref<1x16x768xf32, #tpu.memory_space<vmem>>, vector<1x1x768xf32>
    %339 = vector.shape_cast %338 : vector<1x1x768xf32> to vector<1x768xf32>
    %c0_192 = arith.constant 0 : index
    %340 = arith.index_cast %333 : i32 to index
    %c0_193 = arith.constant 0 : index
    %341 = vector.load %arg3[%c0_192, %340, %c0_193] : memref<1x16x768xf32, #tpu.memory_space<vmem>>, vector<1x1x768xf32>
    %342 = vector.shape_cast %341 : vector<1x1x768xf32> to vector<1x768xf32>
    %343 = arith.index_cast %336 : i32 to index
    %c0_194 = arith.constant 0 : index
    %344 = vector.load %arg4[%343, %c0_194] : memref<16x128xf32, #tpu.memory_space<vmem>>, vector<1x128xf32>
    %c6_i32_195 = arith.constant 6 : i32
    %345 = arith.addi %206, %c6_i32_195 : i32
    %c2_i32_196 = arith.constant 2 : i32
    %346 = arith.muli %345, %c2_i32_196 : i32
    %347 = arith.addi %3, %346 : i32
    %348 = arith.index_cast %347 : i32 to index
    %349 = memref.load %arg2[%348] : memref<64xi32, #tpu.memory_space<smem>>
    %c1_i32_197 = arith.constant 1 : i32
    %350 = arith.addi %347, %c1_i32_197 : i32
    %351 = arith.index_cast %350 : i32 to index
    %352 = memref.load %arg2[%351] : memref<64xi32, #tpu.memory_space<smem>>
    %c0_i32_198 = arith.constant 0 : i32
    %c15_i32_199 = arith.constant 15 : i32
    %353 = arith.maxsi %c0_i32_198, %349 : i32
    %354 = arith.minsi %c15_i32_199, %353 : i32
    %c0_i32_200 = arith.constant 0 : i32
    %c15_i32_201 = arith.constant 15 : i32
    %355 = arith.maxsi %c0_i32_200, %352 : i32
    %356 = arith.minsi %c15_i32_201, %355 : i32
    %357 = arith.subi %356, %354 : i32
    %c0_i32_202 = arith.constant 0 : i32
    %c15_i32_203 = arith.constant 15 : i32
    %358 = arith.maxsi %c0_i32_202, %357 : i32
    %359 = arith.minsi %c15_i32_203, %358 : i32
    %c0_204 = arith.constant 0 : index
    %360 = arith.index_cast %354 : i32 to index
    %c0_205 = arith.constant 0 : index
    %361 = vector.load %arg3[%c0_204, %360, %c0_205] : memref<1x16x768xf32, #tpu.memory_space<vmem>>, vector<1x1x768xf32>
    %362 = vector.shape_cast %361 : vector<1x1x768xf32> to vector<1x768xf32>
    %c0_206 = arith.constant 0 : index
    %363 = arith.index_cast %356 : i32 to index
    %c0_207 = arith.constant 0 : index
    %364 = vector.load %arg3[%c0_206, %363, %c0_207] : memref<1x16x768xf32, #tpu.memory_space<vmem>>, vector<1x1x768xf32>
    %365 = vector.shape_cast %364 : vector<1x1x768xf32> to vector<1x768xf32>
    %366 = arith.index_cast %359 : i32 to index
    %c0_208 = arith.constant 0 : index
    %367 = vector.load %arg4[%366, %c0_208] : memref<16x128xf32, #tpu.memory_space<vmem>>, vector<1x128xf32>
    %c7_i32_209 = arith.constant 7 : i32
    %368 = arith.addi %206, %c7_i32_209 : i32
    %c2_i32_210 = arith.constant 2 : i32
    %369 = arith.muli %368, %c2_i32_210 : i32
    %370 = arith.addi %3, %369 : i32
    %371 = arith.index_cast %370 : i32 to index
    %372 = memref.load %arg2[%371] : memref<64xi32, #tpu.memory_space<smem>>
    %c1_i32_211 = arith.constant 1 : i32
    %373 = arith.addi %370, %c1_i32_211 : i32
    %374 = arith.index_cast %373 : i32 to index
    %375 = memref.load %arg2[%374] : memref<64xi32, #tpu.memory_space<smem>>
    %c0_i32_212 = arith.constant 0 : i32
    %c15_i32_213 = arith.constant 15 : i32
    %376 = arith.maxsi %c0_i32_212, %372 : i32
    %377 = arith.minsi %c15_i32_213, %376 : i32
    %c0_i32_214 = arith.constant 0 : i32
    %c15_i32_215 = arith.constant 15 : i32
    %378 = arith.maxsi %c0_i32_214, %375 : i32
    %379 = arith.minsi %c15_i32_215, %378 : i32
    %380 = arith.subi %379, %377 : i32
    %c0_i32_216 = arith.constant 0 : i32
    %c15_i32_217 = arith.constant 15 : i32
    %381 = arith.maxsi %c0_i32_216, %380 : i32
    %382 = arith.minsi %c15_i32_217, %381 : i32
    %c0_218 = arith.constant 0 : index
    %383 = arith.index_cast %377 : i32 to index
    %c0_219 = arith.constant 0 : index
    %384 = vector.load %arg3[%c0_218, %383, %c0_219] : memref<1x16x768xf32, #tpu.memory_space<vmem>>, vector<1x1x768xf32>
    %385 = vector.shape_cast %384 : vector<1x1x768xf32> to vector<1x768xf32>
    %c0_220 = arith.constant 0 : index
    %386 = arith.index_cast %379 : i32 to index
    %c0_221 = arith.constant 0 : index
    %387 = vector.load %arg3[%c0_220, %386, %c0_221] : memref<1x16x768xf32, #tpu.memory_space<vmem>>, vector<1x1x768xf32>
    %388 = vector.shape_cast %387 : vector<1x1x768xf32> to vector<1x768xf32>
    %389 = arith.index_cast %382 : i32 to index
    %c0_222 = arith.constant 0 : index
    %390 = vector.load %arg4[%389, %c0_222] : memref<16x128xf32, #tpu.memory_space<vmem>>, vector<1x128xf32>
    %391 = tpu.concatenate %224, %247, %270, %293, %316, %339, %362, %385 in 0 : vector<1x768xf32>, vector<1x768xf32>, vector<1x768xf32>, vector<1x768xf32>, vector<1x768xf32>, vector<1x768xf32>, vector<1x768xf32>, vector<1x768xf32> -> vector<8x768xf32>
    %c0_223 = arith.constant 0 : index
    %392 = arith.index_cast %206 : i32 to index
    %c0_224 = arith.constant 0 : index
    %393 = vector.load %arg5[%c0_223, %392, %c0_224] : memref<1x16x1664xf32, #tpu.memory_space<vmem>>, vector<1x8x768xf32>
    %394 = vector.shape_cast %393 : vector<1x8x768xf32> to vector<8x768xf32>
    %395 = vector.shape_cast %391 : vector<8x768xf32> to vector<1x8x768xf32>
    tpu.vector_store %arg5[%c0_223, %392, %c0_224], %395 {strides = array<i32>} : memref<1x16x1664xf32, #tpu.memory_space<vmem>>, vector<1x8x768xf32>,
    %396 = tpu.concatenate %227, %250, %273, %296, %319, %342, %365, %388 in 0 : vector<1x768xf32>, vector<1x768xf32>, vector<1x768xf32>, vector<1x768xf32>, vector<1x768xf32>, vector<1x768xf32>, vector<1x768xf32>, vector<1x768xf32> -> vector<8x768xf32>
    %c0_225 = arith.constant 0 : index
    %397 = arith.index_cast %206 : i32 to index
    %c768_226 = arith.constant 768 : index
    %398 = vector.load %arg5[%c0_225, %397, %c768_226] : memref<1x16x1664xf32, #tpu.memory_space<vmem>>, vector<1x8x768xf32>
    %399 = vector.shape_cast %398 : vector<1x8x768xf32> to vector<8x768xf32>
    %400 = vector.shape_cast %396 : vector<8x768xf32> to vector<1x8x768xf32>
    tpu.vector_store %arg5[%c0_225, %397, %c768_226], %400 {strides = array<i32>} : memref<1x16x1664xf32, #tpu.memory_space<vmem>>, vector<1x8x768xf32>,
    %401 = tpu.concatenate %229, %252, %275, %298, %321, %344, %367, %390 in 0 : vector<1x128xf32>, vector<1x128xf32>, vector<1x128xf32>, vector<1x128xf32>, vector<1x128xf32>, vector<1x128xf32>, vector<1x128xf32>, vector<1x128xf32> -> vector<8x128xf32>
    %c0_227 = arith.constant 0 : index
    %402 = arith.index_cast %206 : i32 to index
    %c1536_228 = arith.constant 1536 : index
    %403 = vector.load %arg5[%c0_227, %402, %c1536_228] : memref<1x16x1664xf32, #tpu.memory_space<vmem>>, vector<1x8x128xf32>
    %404 = vector.shape_cast %403 : vector<1x8x128xf32> to vector<8x128xf32>
    %405 = vector.shape_cast %401 : vector<8x128xf32> to vector<1x8x128xf32>
    tpu.vector_store %arg5[%c0_227, %402, %c1536_228], %405 {strides = array<i32>} : memref<1x16x1664xf32, #tpu.memory_space<vmem>>, vector<1x8x128xf32>,
    %c2_i32_229 = arith.constant 2 : i32
    return
  }
  func.func @transform_0(%arg0: i32, %arg1: i32, %arg2: memref<64xi32, #tpu.memory_space<smem>>) -> (i32, i32, i32) {
    %c0_i32 = arith.constant 0 : i32
    %c0_i32_0 = arith.constant 0 : i32
    %c0_i32_1 = arith.constant 0 : i32
    return %arg0, %c0_i32, %c0_i32_0 : i32, i32, i32
  }
  func.func @transform_1(%arg0: i32, %arg1: i32, %arg2: memref<64xi32, #tpu.memory_space<smem>>) -> (i32, i32) {
    %c0_i32 = arith.constant 0 : i32
    %c0_i32_0 = arith.constant 0 : i32
    %c0_i32_1 = arith.constant 0 : i32
    return %c0_i32, %c0_i32_0 : i32, i32
  }
  func.func @transform_2(%arg0: i32, %arg1: i32, %arg2: memref<64xi32, #tpu.memory_space<smem>>) -> (i32, i32, i32) {
    %c0_i32 = arith.constant 0 : i32
    %c0_i32_0 = arith.constant 0 : i32
    return %arg0, %arg1, %c0_i32 : i32, i32, i32
  }
}

</mosaic_0001>

<bundles_post_ra>
// kernel: tpu_custom_call.1
= control target key start
LH: loop header
LB: loop body
LE: loop exit
PB: predicated region body
PF: predicated region fallthrough
CT: control target
= control target key end

     0   :  { %s2996_s12 = smov [#allocation3]   ;;  %s4230_s0 = inlined_call_operand.hbm [shape: s32[64], index: 0, kind: input, shape index: {}]   ;;  %s4231_s1 = inlined_call_operand.hbm [shape: f32[2,16,768], index: 1, kind: input, shape index: {}]   ;;  %s4232_s2 = inlined_call_operand.hbm [shape: f32[16,128], index: 2, kind: input, shape index: {}]   ;;  %s4233_s3 = inlined_call_operand.hbm [shape: f32[2,16,1664], index: 3, kind: output, shape index: {}]  }
   0x1   :  { %4260 = sst [smem:[#allocation27_spill]] %s4231_s1 }
   0x2   :  { %4261 = sst [smem:[#allocation28_spill]] %s4232_s2 }
   0x3   :  { %4262 = sst [smem:[#allocation29_spill]] %s4233_s3 }
   0x4   :  { %9 = dma.hbm_to_smem %s4230_s0, 16, %s2996_s12, [#allocation2] }
   0x5   :  { %2958 = dma.done.wait [#allocation2], 16 }
   0x6   :  { %2959 = vsyncadd [#allocation2], 4294967280 }
   0x7   :  { %11 = sfence }
   0x8   :  { %12 = vsyncpa [#allocation5], 0 }
   0x9   :  { %14 = vsyncpa [#allocation5 + $0x1], 0 }
   0xa   :  { %15 = vsyncpa [#allocation8], 0 }
   0xb   :  { %16 = vsyncpa [#allocation6], 0 }
   0xc   :  { %18 = vsyncpa [#allocation6 + $0x1], 0  ;;  %s3029_s15 = smov 0   ;;  %s3031_s16 = smov 0  }
   0xd   :  { %s3033_s17 = smov 0   ;;  %s3035_s18 = smov 0  }
   0xe   :  { %s3037_s19 = smov 0   ;;  %s3039_s20 = smov 0  }
   0xf LB: > { %4263 = sst [smem:[#allocation14_spill]] %s2974_s15  ;;  %s2366_s0 = sadd.s32 4294967295, %s2994_s20   ;;  %s2994_s20 = sphi %s3039_s20, %s24_s20   ;;  %s2990_s19 = sphi %s3037_s19, %s4313_s19   ;;  %s2986_s18 = sphi %s3035_s18, %s4312_s18   ;;  %s2982_s17 = sphi %s3033_s17, %s4311_s17   ;;  %s2978_s16 = sphi %s3031_s16, %s4310_s16   ;;  %s2974_s15 = sphi %s3029_s15, %s4309_s15  }
  0x10   : > { %4264 = sst [smem:[#allocation15_spill]] %s2978_s16  ;;  %s2367_s21 = sadd.s32 4294967294, %s2994_s20  }
  0x11   : > { %4265 = sst [smem:[#allocation16_spill]] %s2982_s17  ;;  %p56_p0 = scmp.ne.s32.totalorder %s2978_s16, %s2974_s15 }
  0x12   : > { %4266 = sst [smem:[#allocation17_spill]] %s2986_s18  ;;  %p3063_p1 = scmp.eq.s32.totalorder %s2366_s0, 0 }
  0x13   : > { %4267 = sst [smem:[#allocation18_spill]] %s2990_s19  ;;  %p3067_p2 = scmp.eq.s32.totalorder %s2366_s0, 1 }
  0x14   : > { %4268 = sst [smem:[#allocation19_spill]] %s2994_s20  ;;  %p109_p3 = scmp.eq.s32.totalorder %s2367_s21, 1 }
  0x15   : > { %p3073_p4 = por %p3063_p1, %p56_p0  ;;  %p2368_p5 = scmp.ge.s32.totalorder %s2994_s20, 1 }
  0x16   : > { %p3078_p6 = por %p109_p3, %p56_p0  ;;  %p116_p7 = scmp.lt.s32.totalorder %s2994_s20, 3 }
  0x17   : > { %s4271_s24 = scalar_select %p3073_p4, 1, 0 }
  0x18   : > { %s4272_s25 = scalar_select %p3078_p6, 1, 0 }
  0x19   : > { %p3083_p8 = pnand %p2368_p5, %p116_p7  ;;  %s2997_s27 = smov [#allocation7]  }
  0x1a   : > { %4273 = sst [smem:[#allocation20_spill]] %s4272_s25  ;;  %s128_s28 = sshll.u32 %s2997_s27, 4  ;;  %s129_s28 = int_to_ptr.vmem [resolvable:$true] %s128_s28 }
  0x1b   : > { %p2774_p9 = pneg %p3083_p8  ;;  %p2370_p10 = scmp.ge.s32.totalorder %s2994_s20, 2 }
  0x1c   : > { %s36_s30 = sadd.s32 1, %s2990_s19  ;;  %s2865_s4 = scalar_lea.vmem %s129_s28, 256 }
  0x1d   : > { %p3092_p11 = pnand %p2774_p9, %p3063_p1  ;;  %p2866_p13 = scmp.ne.s32.totalorder %s129_s28, %s2865_s4 }
  0x1e   : > { %p2873_p5 = scmp.lt.s32.totalorder %s129_s28, %s129_s28  ;;  %p2874_p7 = scmp.lt.s32.totalorder %s2865_s4, %s2865_s4 }
  0x1f   : > { %p2856_p12 = pneg %p3092_p11 }
  0x20   : > { %p2875_p6 = por %p2874_p7, %p2873_p5 }
  0x21   : > { %p2868_p0 = pnand %p2866_p13, %p2856_p12 }
  0x23   : > { %p2869_p3 = pneg %p2868_p0 }
  0x25   : > { %p2876_p4 = pnand %p2875_p6, %p2869_p3 }
  0x27   : > { %2879 = shalt.err (!%p2876_p4)
}
  0x28   : > { %s2998_s5 = smov 128   ;;  %s2999_s6 = smov 8  }
  0x29   : > { %s4276_s2 = sld [smem:[#allocation28_spill]]  ;;  %p38_p6 = scmp.ge.s32.totalorder %s36_s30, 2 }
  0x2a   : > { %s43_s9 = sadd.s32 1, %s2982_s17  ;;  %p50_p4 = scmp.ne.s32.totalorder %s2982_s17, %s2978_s16 }
  0x2b   : > { %p51_p9 = scmp.eq.s32.totalorder %s2994_s20, 0  ;;  %s4315_s30 = smov (%p38_p6, %s36_s30), 0 }
  0x2c   : > { %4277 = sst [smem:[#allocation21_spill]] %s4315_s30  ;;  %p3112_p13 = por %p3067_p2, %p50_p4 }
  0x2d   : > { %p52_p12 = por %p51_p9, %p50_p4  ;;  %s40_s11 = ssub.s32 %s2990_s19, %s4315_s30 }
  0x2e   : > { %s4278_s10 = scalar_select %p3112_p13, 1, 0 }
  0x2f   : > { %2777 = dma.hbm_to_vmem [thread:$0]  (!%p3092_p11), %s4276_s2, 256, %s129_s28, [#allocation8], %s2998_s5, %s2998_s5, %s2999_s6  }
  0x30   : > { %4279 = sst [smem:[#allocation22_spill]] %s4278_s10  ;;  %p2787_p0 = scmp.lt.s32.totalorder %s2994_s20, 2 }
  0x31   : > { %p41_p3 = scmp.eq.s32.totalorder %s40_s11, 0  ;;  %s142_s12 = sand.u32 1, %s2982_s17  }
  0x32   : > { %s2761_s13 = smul.u32 96, %s142_s12  ;;  %p3124_p11 = pnand %p2787_p0, %p52_p12 }
  0x33   : > { %s3121_s14 = scalar_select %p41_p3, %s2982_s17, %s43_s9  }
  0x34   : > { %s2762_s0 = smul.u32 1536, %s2990_s19  ;;  %s146_s21 = scalar_lea.vmem [#allocation4], %s2761_s13 }
  0x35   : > { %4280 = sst [smem:[#allocation23_spill]] %s3121_s14  ;;  %s153_s27 = sshll.u32 %s146_s21, 4  ;;  %s154_s27 = int_to_ptr.vmem [resolvable:$true] %s153_s27 }
  0x36   : > { %s4282_s1 = sld [smem:[#allocation27_spill]]  ;;  %s143_s5 = scalar_lea.sflag [#allocation5], %s142_s12 }
  0x37   : > { %p2882_p2 = pneg %p3124_p11  ;;  %s2893_s6 = scalar_lea.vmem %s154_s27, 1536 }
  0x38   : > { %p2894_p5 = scmp.ne.s32.totalorder %s154_s27, %s2893_s6  ;;  %s3000_s7 = smov [#allocation4]  }
  0x39   : > { %s2898_s8 = sshll.u32 %s3000_s7, 4  ;;  %s2899_s8 = int_to_ptr.vmem [resolvable:$false] %s2898_s8 }
  0x3a   : > { %p2896_p7 = pnand %p2894_p5, %p2882_p2  ;;  %s2900_s9 = scalar_lea.vmem %s2899_s8, 3072 }
  0x3b   : > { %p2901_p4 = scmp.lt.s32.totalorder %s154_s27, %s2899_s8  ;;  %p2902_p9 = scmp.lt.s32.totalorder %s2900_s9, %s2893_s6 }
  0x3c   : > { %s152_s4 = scalar_lea.hbm %s4282_s1, %s2762_s0  ;;  %p2897_p6 = pneg %p2896_p7 }
  0x3d   : > { %p2903_p12 = por %p2902_p9, %p2901_p4 }
  0x3f   : > { %p2904_p0 = pnand %p2903_p12, %p2897_p6 }
  0x41   : > { %2907 = shalt.err (!%p2904_p0)
}
  0x42   : > { %s3001_s11 = smov 768   ;;  %s3002_s13 = smov 48  }
  0x43   : > { %2781 = dma.hbm_to_vmem [thread:$0]  (!%p3124_p11), %s152_s4, 1536, %s154_s27, %s143_s5, %s3001_s11, %s3001_s11, %s3002_s13  }
  0x44   : > { %165 = sbr.rel (%p3083_p8) target bundleno = 353 (0x161), region = 28 }
  0x49   : > { %s3138_s12 = sand.u32 1, %s2978_s16   ;;  %p4284_p3 = scmp.ne.s32.totalorder %s4271_s24, 0 }
  0x4a   : > { %4283 = sst [smem:[#allocation24_spill]] %s3138_s12  ;;  %s2763_s0 = smul.u32 96, %s3138_s12 }
  0x4b   : > { %s168_s21 = scalar_lea.sflag [#allocation5], %s3138_s12 }
  0x4c   : > { %s3142_s29 = scalar_lea.vmem [#allocation4], %s2763_s0 }
  0x4d   : > { %2961 = dma.done.wait (%p4284_p3), %s168_s21, 1536  }
  0x4e   : > { %2963 = vsyncadd (%p4284_p3), %s168_s21, 4294965760 }
  0x4f   : > { %2965 = dma.done.wait (%p3063_p1), [#allocation8], 256  }
  0x50   : > { %2967 = vsyncadd (%p3063_p1), [#allocation8], 4294967040  ;;  %s3153_s26 = sshll.u32 %s2986_s18, 5  ;;  %v545_v0 = vlaneseq  ;;  %vm792_vm0 = vcmask 1040384   ;;  %vm799_vm1 = vcmask 1041408   ;;  %vm806_vm2 = vcmask 1042432  }
  0x51   : > { %s203_s27 = sld [smem:[#allocation3 + %s3153_s26]]  ;;  %s4236_s24 = sadd.s32 2, %s3153_s26  ;;  %vm813_vm3 = vcmask 1043456   ;;  %vm820_vm4 = vcmask 1044480   ;;  %vm827_vm5 = vcmask 1045504   ;;  %vm834_vm6 = vcmask 1046528  }
  0x52   : > { %s246_s28 = sld [smem:[#allocation3 + %s4236_s24]]  ;;  %s4235_s23 = sadd.s32 4, %s3153_s26  ;;  %v546_v2 = vshrl.u32 %v545_v0, 7 }
  0x53   : > { %s289_s4 = sld [smem:[#allocation3 + %s4235_s23]]  ;;  %s4237_s22 = sadd.s32 6, %s3153_s26 }
  0x54   : > { %s332_s6 = sld [smem:[#allocation3 + %s4237_s22]]  ;;  %s4238_s7 = sadd.s32 8, %s3153_s26  ;;  %v3213_v10 = vsub.s32 0, %v546_v2  ;;  %v3215_v11 = vsub.s32 1, %v546_v2  ;;  %v3219_v12 = vsub.s32 2, %v546_v2  ;;  %v3221_v13 = vsub.s32 3, %v546_v2 }
  0x55   : > { %s3175_s13 = sld [smem:[#allocation3 + %s4238_s7]]  ;;  %s4286_s30 = sadd.s32 12, %s3153_s26  ;;  %v3224_v14 = vsub.s32 4, %v546_v2  ;;  %v3226_v15 = vsub.s32 5, %v546_v2 }
  0x56   : > { %s3199_s19 = sld [smem:[#allocation3 + %s4286_s30]]  ;;  %s4292_s16 = sadd.s32 8, %s3153_s26 }
  0x57   : > { %p206_p1 = scmp.gt.s32.totalorder %s203_s27, 0  ;;  %p2376_p8 = scmp.lt.s32.totalorder %s203_s27, 15 }
  0x58   : > { %p249_p11 = scmp.gt.s32.totalorder %s246_s28, 0  ;;  %p2393_p2 = scmp.lt.s32.totalorder %s246_s28, 15 }
  0x59   : > { %s4317_s27 = smov (!%p206_p1, %s203_s27), 0  ;;  %p292_p5 = scmp.gt.s32.totalorder %s289_s4, 0 }
  0x5a   : > { %s4319_s28 = smov (!%p249_p11, %s246_s28), 0  ;;  %s4321_s27 = smov (!%p2376_p8, %s4317_s27), 15 }
  0x5b   : > { %s4323_s28 = smov (!%p2393_p2, %s4319_s28), 15  ;;  %s219_s5 = sshra.s32 %s4321_s27, 3 }
  0x5c   : > { %s222_s8 = sand.u32 7, %s4321_s27  ;;  %s2391_s9 = smul.u32 48, %s219_s5 }
  0x5d   : > { %s262_s11 = sshra.s32 %s4323_s28, 3  ;;  %s265_s21 = sand.u32 7, %s4323_s28 }
  0x5e   : > { %s225_s24 = sadd.s32 %s2391_s9, %s222_s8  ;;  %s2408_s1 = smul.u32 48, %s262_s11 }
  0x5f   : > { %s293_s2 = scalar_select %p292_p5, %s289_s4, 0 }
  0x60   : > { %p2410_p7 = scmp.lt.s32.totalorder %s289_s4, 15  ;;  %p335_p6 = scmp.gt.s32.totalorder %s332_s6, 0 }
  0x61   : > { %s226_s22 = scalar_lea.vmem %s3142_s29, %s225_s24 [#allocation4]  ;;  %p2427_p4 = scmp.lt.s32.totalorder %s332_s6, 15 }
  0x62   : > { %s4325_s2 = smov (!%p2410_p7, %s293_s2), 15  ;;  %s4327_s6 = smov (!%p335_p6, %s332_s6), 0  ;;  %v227_v1 = vld [vmem:[%s226_s22] ss:$8 sm:$0xf] }
  0x63   : > { %s268_s5 = sadd.s32 %s2408_s1, %s265_s21  ;;  %s305_s7 = sshra.s32 %s4325_s2, 3  ;;  %v228_v3 = vld [vmem:[%s226_s22] ss:$8 sm:$0x30] }
  0x64   : > { %s308_s23 = sand.u32 7, %s4325_s2  ;;  %s2425_s0 = smul.u32 48, %s305_s7  ;;  %v229_v7 = vor.u32 %v228_v3, %v227_v1 }
  0x65   : > { %s4329_s6 = smov (!%p2427_p4, %s4327_s6), 15  ;;  %p378_p9 = scmp.gt.s32.totalorder %s3175_s13, 0 }
  0x66   : > { %s4285_s4 = sadd.s32 10, %s3153_s26  ;;  %s269_s8 = scalar_lea.vmem %s3142_s29, %s268_s5 [#allocation4]  ;;  %v548_v19 = vrot.slane %v229_v7, %v3213_v10  ;;  %v552_v21 = vrot.slane %v229_v7, %v3215_v11  ;;  %v556_v23 = vrot.slane %v229_v7, %v3219_v12  ;;  %v560_v25 = vrot.slane %v229_v7, %v3221_v13 }
  0x67   : > { %s3190_s24 = sld [smem:[#allocation3 + %s4285_s4]]  ;;  %s348_s9 = sshra.s32 %s4329_s6, 3  ;;  %v270_v4 = vld [vmem:[%s269_s8] ss:$8 sm:$0xf]  ;;  %v564_v27 = vrot.slane %v229_v7, %v3224_v14  ;;  %v568_v29 = vrot.slane %v229_v7, %v3226_v15 }
  0x68   : > { %s311_s11 = sadd.s32 %s2425_s0, %s308_s23  ;;  %p2444_p12 = scmp.lt.s32.totalorder %s3175_s13, 15  ;;  %v271_v5 = vld [vmem:[%s269_s8] ss:$8 sm:$0x30] }
  0x69   : > { %s351_s1 = sand.u32 7, %s4329_s6  ;;  %s2442_s21 = smul.u32 48, %s348_s9  ;;  %v272_v8 = vor.u32 %v271_v5, %v270_v4 }
  0x6a   : > { %s379_s7 = scalar_select %p378_p9, %s3175_s13, 0 }
  0x6b   : > { %s312_s5 = scalar_lea.vmem %s3142_s29, %s311_s11 [#allocation4]  ;;  %s354_s4 = sadd.s32 %s2442_s21, %s351_s1  ;;  %v579_v20 = vrot.slane %v272_v8, %v3213_v10  ;;  %v583_v22 = vrot.slane %v272_v8, %v3215_v11  ;;  %v587_v24 = vrot.slane %v272_v8, %v3219_v12  ;;  %v591_v26 = vrot.slane %v272_v8, %v3221_v13 }
  0x6c   : > { %s4331_s7 = smov (!%p2444_p12, %s379_s7), 15  ;;  %v313_v6 = vld [vmem:[%s312_s5] ss:$8 sm:$0xf]  ;;  %s355_s22 = scalar_lea.vmem %s3142_s29, %s354_s4 [#allocation4]  ;;  %v595_v28 = vrot.slane %v272_v8, %v3224_v14  ;;  %v599_v30 = vrot.slane %v272_v8, %v3226_v15 }
  0x6d   : > { %p421_p0 = scmp.gt.s32.totalorder %s3190_s24, 0  ;;  %s391_s30 = sshra.s32 %s4331_s7, 3  ;;  %v314_v9 = vld [vmem:[%s312_s5] ss:$8 sm:$0x30]  ;;  %v793_v35 = vsel %vm792_vm0, %v548_v19, %v579_v20  ;;  %v794_v36 = vsel %vm792_vm0, %v552_v21, %v583_v22  ;;  %v795_v41 = vsel %vm792_vm0, %v556_v23, %v587_v24  ;;  %v796_v42 = vsel %vm792_vm0, %v560_v25, %v591_v26 }
  0x6e   : > { %s394_s0 = sand.u32 7, %s4331_s7  ;;  %s2459_s9 = smul.u32 48, %s391_s30  ;;  %v3228_v16 = vor.u32 %v314_v9, %v313_v6  ;;  %v356_v17 = vld [vmem:[%s355_s22] ss:$8 sm:$0xf]  ;;  %v797_v43 = vsel %vm792_vm0, %v564_v27, %v595_v28  ;;  %v798_v44 = vsel %vm792_vm0, %v568_v29, %v599_v30 }
  0x6f   : > { %s3208_s23 = scalar_select %p421_p0, %s3190_s24, 0  ;;  %v357_v18 = vld [vmem:[%s355_s22] ss:$8 sm:$0x30] }
  0x70   : > { %p2461_p3 = scmp.lt.s32.totalorder %s3190_s24, 15  ;;  %p464_p1 = scmp.gt.s32.totalorder %s3199_s19, 0  ;;  %v3256_v31 = vor.u32 %v357_v18, %v356_v17  ;;  %v610_v33 = vrot.slane %v3228_v16, %v3213_v10  ;;  %v614_v37 = vrot.slane %v3228_v16, %v3215_v11  ;;  %v618_v38 = vrot.slane %v3228_v16, %v3219_v12 }
  0x71   : > { %s397_s13 = sadd.s32 %s2459_s9, %s394_s0  ;;  %s4241_s8 = sadd.s32 14, %s3153_s26  ;;  %v622_v39 = vrot.slane %v3228_v16, %v3221_v13  ;;  %v626_v40 = vrot.slane %v3228_v16, %v3224_v14  ;;  %v630_v48 = vrot.slane %v3228_v16, %v3226_v15 }
  0x72   : > { %s3232_s11 = sld [smem:[#allocation3 + %s4241_s8]]  ;;  %s398_s1 = scalar_lea.vmem %s3142_s29, %s397_s13 [#allocation4]  ;;  %v641_v46 = vrot.slane %v3256_v31, %v3213_v10  ;;  %v800_v47 = vsel %vm799_vm1, %v793_v35, %v610_v33  ;;  %v645_v51 = vrot.slane %v3256_v31, %v3215_v11  ;;  %v649_v52 = vrot.slane %v3256_v31, %v3219_v12 }
  0x73   : > { %p2478_p8 = scmp.lt.s32.totalorder %s3199_s19, 15  ;;  %s4333_s23 = smov (!%p2461_p3, %s3208_s23), 15  ;;  %v399_v32 = vld [vmem:[%s398_s1] ss:$8 sm:$0xf]  ;;  %v653_v53 = vrot.slane %v3256_v31, %v3221_v13  ;;  %v657_v54 = vrot.slane %v3256_v31, %v3224_v14  ;;  %v801_v55 = vsel %vm799_vm1, %v794_v36, %v614_v37  ;;  %v802_v56 = vsel %vm799_vm1, %v795_v41, %v618_v38 }
  0x74   : > { %s465_s21 = scalar_select %p464_p1, %s3199_s19, 0  ;;  %v400_v34 = vld [vmem:[%s398_s1] ss:$8 sm:$0x30]  ;;  %v803_v57 = vsel %vm799_vm1, %v796_v42, %v622_v39  ;;  %v804_v58 = vsel %vm799_vm1, %v797_v43, %v626_v40  ;;  %v661_v60 = vrot.slane %v3256_v31, %v3226_v15  ;;  %v807_v62 = vsel %vm806_vm2, %v800_v47, %v641_v46 }
  0x75   : > { %s434_s24 = sshra.s32 %s4333_s23, 3  ;;  %s437_s5 = sand.u32 7, %s4333_s23  ;;  %v3282_v45 = vor.u32 %v400_v34, %v399_v32  ;;  %v805_v0 = vsel %vm799_vm1, %v798_v44, %v630_v48  ;;  %v808_v1 = vsel %vm806_vm2, %v801_v55, %v645_v51  ;;  %v809_v2 = vsel %vm806_vm2, %v802_v56, %v649_v52 }
  0x76   : > { %s2476_s4 = smul.u32 48, %s434_s24  ;;  %s204_s30 = sadd.s32 1, %s3153_s26  ;;  %v810_v3 = vsel %vm806_vm2, %v803_v57, %v653_v53  ;;  %v811_v4 = vsel %vm806_vm2, %v804_v58, %v657_v54  ;;  %v812_v20 = vsel %vm806_vm2, %v805_v0, %v661_v60 }
  0x77   : > { %s4335_s21 = smov (!%p2478_p8, %s465_s21), 15  ;;  %v672_v61 = vrot.slane %v3282_v45, %v3213_v10  ;;  %v676_v63 = vrot.slane %v3282_v45, %v3215_v11  ;;  %v680_v7 = vrot.slane %v3282_v45, %v3219_v12  ;;  %v684_v8 = vrot.slane %v3282_v45, %v3221_v13 }
  0x78   : > { %s440_s0 = sadd.s32 %s2476_s4, %s437_s5  ;;  %p507_p11 = scmp.gt.s32.totalorder %s3232_s11, 0  ;;  %v688_v9 = vrot.slane %v3282_v45, %v3224_v14  ;;  %v692_v16 = vrot.slane %v3282_v45, %v3226_v15 }
  0x79   : > { %s441_s19 = scalar_lea.vmem %s3142_s29, %s440_s0 [#allocation4]  ;;  %s477_s22 = sshra.s32 %s4335_s21, 3  ;;  %v814_v21 = vsel %vm813_vm3, %v807_v62, %v672_v61  ;;  %v815_v22 = vsel %vm813_vm3, %v808_v1, %v676_v63  ;;  %v816_v27 = vsel %vm813_vm3, %v809_v2, %v680_v7  ;;  %v817_v28 = vsel %vm813_vm3, %v810_v3, %v684_v8 }
  0x7a   : > { %v442_v49 = vld [vmem:[%s441_s19] ss:$8 sm:$0xf]  ;;  %s480_s9 = sand.u32 7, %s4335_s21  ;;  %s2493_s13 = smul.u32 48, %s477_s22  ;;  %v818_v29 = vsel %vm813_vm3, %v811_v4, %v688_v9  ;;  %v819_v30 = vsel %vm813_vm3, %v812_v20, %v692_v16 }
  0x7b   : > { %v443_v50 = vld [vmem:[%s441_s19] ss:$8 sm:$0x30]  ;;  %s508_s1 = scalar_select %p507_p11, %s3232_s11, 0 }
  0x7c   : > { %v444_v59 = vor.u32 %v443_v50, %v442_v49  ;;  %s483_s24 = sadd.s32 %s2493_s13, %s480_s9  ;;  %p2495_p2 = scmp.lt.s32.totalorder %s3232_s11, 15 }
  0x7d   : > { %s484_s5 = scalar_lea.vmem %s3142_s29, %s483_s24 [#allocation4]  ;;  %s3323_s4 = sld [smem:[#allocation3 + %s204_s30]] }
  0x7e   : > { %v485_v5 = vld [vmem:[%s484_s5] ss:$8 sm:$0xf]  ;;  %s4337_s1 = smov (!%p2495_p2, %s508_s1), 15  ;;  %v703_v18 = vrot.slane %v444_v59, %v3213_v10  ;;  %v707_v19 = vrot.slane %v444_v59, %v3215_v11  ;;  %s4288_s30 = sadd.s32 2, %s3153_s26  ;;  %v711_v23 = vrot.slane %v444_v59, %v3219_v12  ;;  %v715_v24 = vrot.slane %v444_v59, %v3221_v13 }
  0x7f   : > { %v486_v6 = vld [vmem:[%s484_s5] ss:$8 sm:$0x30]  ;;  %4287 = sst [smem:[#allocation25_spill]] %s4337_s1  ;;  %s247_s0 = sadd.s32 1, %s4288_s30  ;;  %v719_v25 = vrot.slane %v444_v59, %v3224_v14  ;;  %v723_v26 = vrot.slane %v444_v59, %v3226_v15 }
  0x80   : > { %v487_v17 = vor.u32 %v486_v6, %v485_v5  ;;  %s4289_s19 = sadd.s32 4, %s3153_s26  ;;  %s520_s22 = sshra.s32 %s4337_s1, 3  ;;  %v821_v32 = vsel %vm820_vm4, %v814_v21, %v703_v18  ;;  %v822_v34 = vsel %vm820_vm4, %v815_v22, %v707_v19  ;;  %v823_v39 = vsel %vm820_vm4, %v816_v27, %v711_v23 }
  0x81   : > { %s290_s11 = sadd.s32 1, %s4289_s19  ;;  %s523_s9 = sand.u32 7, %s4337_s1  ;;  %v824_v40 = vsel %vm820_vm4, %v817_v28, %v715_v24  ;;  %v825_v41 = vsel %vm820_vm4, %v818_v29, %v719_v25  ;;  %v826_v42 = vsel %vm820_vm4, %v819_v30, %v723_v26 }
  0x82   : > { %s2510_s13 = smul.u32 48, %s520_s22  ;;  %s3356_s24 = sld [smem:[#allocation3 + %s247_s0]]  ;;  %v734_v31 = vrot.slane %v487_v17, %v3213_v10  ;;  %v738_v33 = vrot.slane %v487_v17, %v3215_v11  ;;  %v742_v35 = vrot.slane %v487_v17, %v3219_v12  ;;  %v746_v36 = vrot.slane %v487_v17, %v3221_v13 }
  0x83   : > { %p210_p5 = scmp.gt.s32.totalorder %s3323_s4, 0  ;;  %s2764_s5 = smul.u32 208, %s3138_s12  ;;  %v750_v37 = vrot.slane %v487_v17, %v3224_v14  ;;  %v754_v38 = vrot.slane %v487_v17, %v3226_v15 }
  0x84   : > { %s526_s30 = sadd.s32 %s2510_s13, %s523_s9  ;;  %s3373_s19 = sld [smem:[#allocation3 + %s290_s11]]  ;;  %v828_v46 = vsel %vm827_vm5, %v821_v32, %v734_v31  ;;  %v829_v47 = vsel %vm827_vm5, %v822_v34, %v738_v33  ;;  %v830_v48 = vsel %vm827_vm5, %v823_v39, %v742_v35  ;;  %v831_v49 = vsel %vm827_vm5, %v824_v40, %v746_v36 }
  0x85   : > { %s527_s0 = scalar_lea.vmem %s3142_s29, %s526_s30 [#allocation4]  ;;  %v832_v50 = vsel %vm827_vm5, %v825_v41, %v750_v37  ;;  %v833_v51 = vsel %vm827_vm5, %v826_v42, %v754_v38  ;;  %p2381_p7 = scmp.lt.s32.totalorder %s3323_s4, 15 }
  0x86   : > { %v528_v43 = vld [vmem:[%s527_s0] ss:$8 sm:$0xf]  ;;  %s211_s22 = scalar_select %p210_p5, %s3323_s4, 0 }
  0x87   : > { %v529_v44 = vld [vmem:[%s527_s0] ss:$8 sm:$0x30]  ;;  %s3400_s9 = scalar_lea.vmem [#allocation9], %s2764_s5  ;;  %s4291_s13 = sadd.s32 6, %s3153_s26 }
  0x88   : > { %v530_v45 = vor.u32 %v529_v44, %v528_v43  ;;  %p253_p6 = scmp.gt.s32.totalorder %s3356_s24, 0  ;;  %p2398_p4 = scmp.lt.s32.totalorder %s3356_s24, 15 }
  0x89   : > { %4290 = sst [smem:[#allocation26_spill]] %s3400_s9  ;;  %s4339_s22 = smov (!%p2381_p7, %s211_s22), 15 }
  0x8a   : > { %v765_v52 = vrot.slane %v530_v45, %v3213_v10  ;;  %v769_v53 = vrot.slane %v530_v45, %v3215_v11  ;;  %v773_v54 = vrot.slane %v530_v45, %v3219_v12  ;;  %v777_v55 = vrot.slane %v530_v45, %v3221_v13  ;;  %s254_s11 = scalar_select %p253_p6, %s3356_s24, 0 }
  0x8b   : > { %v781_v56 = vrot.slane %v530_v45, %v3224_v14  ;;  %v785_v57 = vrot.slane %v530_v45, %v3226_v15  ;;  %p296_p9 = scmp.gt.s32.totalorder %s3373_s19, 0  ;;  %s333_s5 = sadd.s32 1, %s4291_s13 }
  0x8c   : > { %v835_v58 = vsel %vm834_vm6, %v828_v46, %v765_v52  ;;  %v836_v59 = vsel %vm834_vm6, %v829_v47, %v769_v53  ;;  %v837_v60 = vsel %vm834_vm6, %v830_v48, %v773_v54  ;;  %v838_v61 = vsel %vm834_vm6, %v831_v49, %v777_v55  ;;  %s4341_s11 = smov (!%p2398_p4, %s254_s11), 15  ;;  %s230_s30 = sshra.s32 %s4339_s22, 3 }
  0x8d   : > { %844 = vst [vmem:[%s3400_s9] sm:$0xff] %v835_v58  ;;  %845 = vst [vmem:[%s3400_s9 + $0x8] sm:$0xff] %v836_v59  ;;  %v839_v62 = vsel %vm834_vm6, %v832_v50, %v781_v56  ;;  %v840_v63 = vsel %vm834_vm6, %v833_v51, %v785_v57  ;;  %s233_s0 = sand.u32 7, %s4339_s22  ;;  %s273_s8 = sshra.s32 %s4341_s11, 3 }
  0x8e   : > { %846 = vst [vmem:[%s3400_s9 + $0x10] sm:$0xff] %v837_v60  ;;  %847 = vst [vmem:[%s3400_s9 + $0x18] sm:$0xff] %v838_v61  ;;  %p2415_p12 = scmp.lt.s32.totalorder %s3373_s19, 15  ;;  %s4343_s19 = smov (!%p296_p9, %s3373_s19), 0 }
  0x8f   : > { %848 = vst [vmem:[%s3400_s9 + $0x20] sm:$0xff] %v839_v62  ;;  %849 = vst [vmem:[%s3400_s9 + $0x28] sm:$0xff] %v840_v63  ;;  %s2392_s4 = smul.u32 48, %s230_s30  ;;  %s334_s14 = sld [smem:[#allocation3 + %s333_s5]] }
  0x90   : > { %s2409_s17 = smul.u32 48, %s273_s8  ;;  %s376_s24 = sadd.s32 1, %s4292_s16 }
  0x91   : > { %s276_s20 = sand.u32 7, %s4341_s11  ;;  %s4345_s19 = smov (!%p2415_p12, %s4343_s19), 15 }
  0x92   : > { %s236_s13 = sadd.s32 %s2392_s4, %s233_s0  ;;  %s377_s25 = sld [smem:[#allocation3 + %s376_s24]] }
  0x93   : > { %s279_s15 = sadd.s32 %s2409_s17, %s276_s20  ;;  %s316_s3 = sshra.s32 %s4345_s19, 3 }
  0x94   : > { %s2426_s10 = smul.u32 48, %s316_s3  ;;  %s4293_s12 = sadd.s32 10, %s3153_s26 }
  0x95   : > { %s419_s18 = sadd.s32 1, %s4293_s12  ;;  %s319_s9 = sand.u32 7, %s4345_s19 }
  0x96   : > { %p339_p0 = scmp.gt.s32.totalorder %s334_s14, 0  ;;  %s237_s30 = scalar_lea.vmem %s3142_s29, %s236_s13 [#allocation4] }
  0x97   : > { %s280_s5 = scalar_lea.vmem %s3142_s29, %s279_s15 [#allocation4]  ;;  %p2432_p3 = scmp.lt.s32.totalorder %s334_s14, 15  ;;  %v238_v0 = vld [vmem:[%s237_s30] ss:$8 sm:$0xf] }
  0x98   : > { %s3437_s16 = sld [smem:[#allocation3 + %s419_s18]]  ;;  %s322_s8 = sadd.s32 %s2426_s10, %s319_s9  ;;  %v239_v1 = vld [vmem:[%s237_s30] ss:$8 sm:$0x30] }
  0x99   : > { %s4294_s1 = sadd.s32 12, %s3153_s26  ;;  %s4347_s14 = smov (!%p339_p0, %s334_s14), 0  ;;  %v281_v2 = vld [vmem:[%s280_s5] ss:$8 sm:$0xf]  ;;  %v240_v4 = vor.u32 %v239_v1, %v238_v0 }
  0x9a   : > { %s462_s0 = sadd.s32 1, %s4294_s1  ;;  %p382_p1 = scmp.gt.s32.totalorder %s377_s25, 0  ;;  %v282_v3 = vld [vmem:[%s280_s5] ss:$8 sm:$0x30] }
  0x9b   : > { %p2449_p8 = scmp.lt.s32.totalorder %s377_s25, 15  ;;  %s4349_s14 = smov (!%p2432_p3, %s4347_s14), 15  ;;  %v283_v5 = vor.u32 %v282_v3, %v281_v2  ;;  %v854_v17 = vrot.slane %v240_v4, %v3213_v10  ;;  %v858_v19 = vrot.slane %v240_v4, %v3215_v11  ;;  %v862_v21 = vrot.slane %v240_v4, %v3219_v12 }
  0x9c   : > { %s4351_s25 = smov (!%p382_p1, %s377_s25), 0  ;;  %s359_s3 = sshra.s32 %s4349_s14, 3  ;;  %v866_v22 = vrot.slane %v240_v4, %v3221_v13  ;;  %v870_v23 = vrot.slane %v240_v4, %v3224_v14  ;;  %v874_v24 = vrot.slane %v240_v4, %v3226_v15 }
  0x9d   : > { %s3444_s15 = sld [smem:[#allocation3 + %s462_s0]]  ;;  %s362_s17 = sand.u32 7, %s4349_s14  ;;  %v885_v18 = vrot.slane %v283_v5, %v3213_v10  ;;  %v889_v20 = vrot.slane %v283_v5, %v3215_v11  ;;  %v893_v25 = vrot.slane %v283_v5, %v3219_v12  ;;  %v897_v26 = vrot.slane %v283_v5, %v3221_v13 }
  0x9e   : > { %s2443_s18 = smul.u32 48, %s359_s3  ;;  %s4353_s25 = smov (!%p2449_p8, %s4351_s25), 15  ;;  %v901_v27 = vrot.slane %v283_v5, %v3224_v14  ;;  %v905_v28 = vrot.slane %v283_v5, %v3226_v15 }
  0x9f   : > { %p425_p11 = scmp.gt.s32.totalorder %s3437_s16, 0  ;;  %s3452_s20 = ssub.s32 %s4339_s22, %s4321_s27  ;;  %v1098_v33 = vsel %vm792_vm0, %v854_v17, %v885_v18  ;;  %v1099_v34 = vsel %vm792_vm0, %v858_v19, %v889_v20  ;;  %v1100_v39 = vsel %vm792_vm0, %v862_v21, %v893_v25  ;;  %v1101_v40 = vsel %vm792_vm0, %v866_v22, %v897_v26 }
  0xa0   : > { %s323_s10 = scalar_lea.vmem %s3142_s29, %s322_s8 [#allocation4]  ;;  %s402_s12 = sshra.s32 %s4353_s25, 3  ;;  %v1102_v41 = vsel %vm792_vm0, %v870_v23, %v901_v27  ;;  %v1103_v42 = vsel %vm792_vm0, %v874_v24, %v905_v28 }
  0xa1   : > { %s365_s1 = sadd.s32 %s2443_s18, %s362_s17  ;;  %p2466_p2 = scmp.lt.s32.totalorder %s3437_s16, 15  ;;  %v324_v6 = vld [vmem:[%s323_s10] ss:$8 sm:$0xf] }
  0xa2   : > { %s405_s9 = sand.u32 7, %s4353_s25  ;;  %s2460_s4 = smul.u32 48, %s402_s12  ;;  %v325_v7 = vld [vmem:[%s323_s10] ss:$8 sm:$0x30] }
  0xa3   : > { %s426_s24 = scalar_select %p425_p11, %s3437_s16, 0  ;;  %v3471_v8 = vor.u32 %v325_v7, %v324_v6 }
  0xa4   : > { %s408_s27 = sadd.s32 %s2460_s4, %s405_s9  ;;  %p468_p5 = scmp.gt.s32.totalorder %s3444_s15, 0 }
  0xa5   : > { %s366_s22 = scalar_lea.vmem %s3142_s29, %s365_s1 [#allocation4]  ;;  %s3463_s13 = ssub.s32 %s4341_s11, %s4323_s28  ;;  %v916_v31 = vrot.slane %v3471_v8, %v3213_v10  ;;  %v920_v35 = vrot.slane %v3471_v8, %v3215_v11  ;;  %v924_v36 = vrot.slane %v3471_v8, %v3219_v12  ;;  %v928_v37 = vrot.slane %v3471_v8, %v3221_v13 }
  0xa6   : > { %s409_s30 = scalar_lea.vmem %s3142_s29, %s408_s27 [#allocation4]  ;;  %p2483_p7 = scmp.lt.s32.totalorder %s3444_s15, 15  ;;  %v367_v9 = vld [vmem:[%s366_s22] ss:$8 sm:$0xf]  ;;  %v932_v38 = vrot.slane %v3471_v8, %v3224_v14  ;;  %v936_v48 = vrot.slane %v3471_v8, %v3226_v15 }
  0xa7   : > { %s4355_s24 = smov (!%p2466_p2, %s426_s24), 15  ;;  %v368_v16 = vld [vmem:[%s366_s22] ss:$8 sm:$0x30]  ;;  %s4295_s11 = sadd.s32 14, %s3153_s26  ;;  %v1104_v47 = vsel %vm799_vm1, %v1098_v33, %v916_v31  ;;  %v1105_v53 = vsel %vm799_vm1, %v1099_v34, %v920_v35  ;;  %v1106_v54 = vsel %vm799_vm1, %v1100_v39, %v924_v36  ;;  %v1107_v55 = vsel %vm799_vm1, %v1101_v40, %v928_v37 }
  0xa8   : > { %s469_s5 = scalar_select %p468_p5, %s3444_s15, 0  ;;  %v3494_v29 = vor.u32 %v368_v16, %v367_v9  ;;  %v410_v30 = vld [vmem:[%s409_s30] ss:$8 sm:$0xf]  ;;  %v1108_v56 = vsel %vm799_vm1, %v1102_v41, %v932_v38  ;;  %v1109_v0 = vsel %vm799_vm1, %v1103_v42, %v936_v48 }
  0xa9   : > { %s445_s8 = sshra.s32 %s4355_s24, 3  ;;  %s448_s0 = sand.u32 7, %s4355_s24  ;;  %v411_v32 = vld [vmem:[%s409_s30] ss:$8 sm:$0x30] }
  0xaa   : > { %s2477_s28 = smul.u32 48, %s445_s8  ;;  %s505_s16 = sadd.s32 1, %s4295_s11  ;;  %v412_v43 = vor.u32 %v411_v32, %v410_v30  ;;  %v947_v46 = vrot.slane %v3494_v29, %v3213_v10  ;;  %v951_v49 = vrot.slane %v3494_v29, %v3215_v11  ;;  %v955_v50 = vrot.slane %v3494_v29, %v3219_v12 }
  0xab   : > { %s4357_s5 = smov (!%p2483_p7, %s469_s5), 15  ;;  %s3496_s15 = sld [smem:[#allocation3 + %s505_s16]]  ;;  %v959_v51 = vrot.slane %v3494_v29, %v3221_v13  ;;  %v963_v52 = vrot.slane %v3494_v29, %v3224_v14  ;;  %v967_v59 = vrot.slane %v3494_v29, %v3226_v15 }
  0xac   : > { %s451_s3 = sadd.s32 %s2477_s28, %s448_s0  ;;  %s488_s18 = sshra.s32 %s4357_s5, 3  ;;  %v978_v61 = vrot.slane %v412_v43, %v3213_v10  ;;  %v1110_v62 = vsel %vm806_vm2, %v1104_v47, %v947_v46  ;;  %v982_v63 = vrot.slane %v412_v43, %v3215_v11  ;;  %v1111_v1 = vsel %vm806_vm2, %v1105_v53, %v951_v49 }
  0xad   : > { %s452_s17 = scalar_lea.vmem %s3142_s29, %s451_s3 [#allocation4]  ;;  %s3514_s10 = ssub.s32 %s4345_s19, %s4325_s2  ;;  %v1112_v2 = vsel %vm806_vm2, %v1106_v54, %v955_v50  ;;  %v1113_v3 = vsel %vm806_vm2, %v1107_v55, %v959_v51  ;;  %v1114_v4 = vsel %vm806_vm2, %v1108_v56, %v963_v52  ;;  %v986_v5 = vrot.slane %v412_v43, %v3219_v12 }
  0xae   : > { %s3518_s12 = ssub.s32 %s4349_s14, %s4329_s6  ;;  %s491_s1 = sand.u32 7, %s4357_s5  ;;  %v453_v44 = vld [vmem:[%s452_s17] ss:$8 sm:$0xf]  ;;  %v990_v6 = vrot.slane %v412_v43, %v3221_v13  ;;  %v994_v7 = vrot.slane %v412_v43, %v3224_v14  ;;  %v998_v8 = vrot.slane %v412_v43, %v3226_v15  ;;  %v1115_v18 = vsel %vm806_vm2, %v1109_v0, %v967_v59 }
  0xaf   : > { %s2494_s9 = smul.u32 48, %s488_s18  ;;  %v454_v45 = vld [vmem:[%s452_s17] ss:$8 sm:$0x30]  ;;  %s3532_s2 = ssub.s32 %s4353_s25, %s4331_s7  ;;  %v1116_v19 = vsel %vm813_vm3, %v1110_v62, %v978_v61  ;;  %v1117_v20 = vsel %vm813_vm3, %v1111_v1, %v982_v63  ;;  %v1118_v25 = vsel %vm813_vm3, %v1112_v2, %v986_v5 }
  0xb0   : > { %s3536_s14 = ssub.s32 %s4355_s24, %s4333_s23  ;;  %p215_p6 = scmp.gt.s32.totalorder %s3452_s20, 0  ;;  %v455_v57 = vor.u32 %v454_v45, %v453_v44  ;;  %v1119_v26 = vsel %vm813_vm3, %v1113_v3, %v990_v6  ;;  %v1120_v27 = vsel %vm813_vm3, %v1114_v4, %v994_v7  ;;  %v1121_v28 = vsel %vm813_vm3, %v1115_v18, %v998_v8 }
  0xb1   : > { %s494_s6 = sadd.s32 %s2494_s9, %s491_s1  ;;  %p511_p4 = scmp.gt.s32.totalorder %s3496_s15, 0 }
  0xb2   : > { %s495_s25 = scalar_lea.vmem %s3142_s29, %s494_s6 [#allocation4]  ;;  %p2386_p9 = scmp.lt.s32.totalorder %s3452_s20, 15  ;;  %v1009_v16 = vrot.slane %v455_v57, %v3213_v10  ;;  %v1013_v17 = vrot.slane %v455_v57, %v3215_v11  ;;  %v1017_v21 = vrot.slane %v455_v57, %v3219_v12  ;;  %v1021_v22 = vrot.slane %v455_v57, %v3221_v13 }
  0xb3   : > { %v496_v58 = vld [vmem:[%s495_s25] ss:$8 sm:$0xf]  ;;  %p258_p12 = scmp.gt.s32.totalorder %s3463_s13, 0  ;;  %p2500_p0 = scmp.lt.s32.totalorder %s3496_s15, 15  ;;  %v1025_v23 = vrot.slane %v455_v57, %v3224_v14  ;;  %v1029_v24 = vrot.slane %v455_v57, %v3226_v15 }
  0xb4   : > { %v497_v60 = vld [vmem:[%s495_s25] ss:$8 sm:$0x30]  ;;  %s512_s7 = scalar_select %p511_p4, %s3496_s15, 0  ;;  %v1122_v30 = vsel %vm820_vm4, %v1116_v19, %v1009_v16  ;;  %v1123_v32 = vsel %vm820_vm4, %v1117_v20, %v1013_v17  ;;  %v1124_v37 = vsel %vm820_vm4, %v1118_v25, %v1017_v21  ;;  %v1125_v38 = vsel %vm820_vm4, %v1119_v26, %v1021_v22 }
  0xb5   : > { %p2403_p3 = scmp.lt.s32.totalorder %s3463_s13, 15  ;;  %v498_v9 = vor.u32 %v497_v60, %v496_v58  ;;  %s4296_s27 = sld [smem:[#allocation25_spill]]  ;;  %v1126_v39 = vsel %vm820_vm4, %v1120_v27, %v1025_v23  ;;  %v1127_v40 = vsel %vm820_vm4, %v1121_v28, %v1029_v24 }
  0xb6   : > { %s216_s23 = scalar_select %p215_p6, %s3452_s20, 0 }
  0xb7   : > { %s4359_s7 = smov (!%p2500_p0, %s512_s7), 15  ;;  %v1040_v29 = vrot.slane %v498_v9, %v3213_v10  ;;  %v1044_v31 = vrot.slane %v498_v9, %v3215_v11  ;;  %v1048_v33 = vrot.slane %v498_v9, %v3219_v12  ;;  %v1052_v34 = vrot.slane %v498_v9, %v3221_v13  ;;  %p301_p1 = scmp.gt.s32.totalorder %s3514_s10, 0 }
  0xb8   : > { %s4361_s23 = smov (!%p2386_p9, %s216_s23), 15  ;;  %s531_s19 = sshra.s32 %s4359_s7, 3  ;;  %v1056_v35 = vrot.slane %v498_v9, %v3224_v14  ;;  %v1060_v36 = vrot.slane %v498_v9, %v3226_v15 }
  0xb9   : > { %s534_s4 = sand.u32 7, %s4359_s7  ;;  %s2511_s24 = smul.u32 48, %s531_s19  ;;  %v1128_v44 = vsel %vm827_vm5, %v1122_v30, %v1040_v29  ;;  %v1129_v45 = vsel %vm827_vm5, %v1123_v32, %v1044_v31  ;;  %v1130_v46 = vsel %vm827_vm5, %v1124_v37, %v1048_v33  ;;  %v1131_v47 = vsel %vm827_vm5, %v1125_v38, %v1052_v34 }
  0xba   : > { %s259_s20 = scalar_select %p258_p12, %s3463_s13, 0  ;;  %v1132_v48 = vsel %vm827_vm5, %v1126_v39, %v1056_v35  ;;  %v1133_v49 = vsel %vm827_vm5, %v1127_v40, %v1060_v36 }
  0xbb   : > { %s537_s22 = sadd.s32 %s2511_s24, %s534_s4  ;;  %p2420_p8 = scmp.lt.s32.totalorder %s3514_s10, 15 }
  0xbc   : > { %s538_s30 = scalar_lea.vmem %s3142_s29, %s537_s22 [#allocation4]  ;;  %s3616_s8 = ssub.s32 %s4357_s5, %s4335_s21 }
  0xbd   : > { %v539_v41 = vld [vmem:[%s538_s30] ss:$8 sm:$0xf]  ;;  %s3620_s0 = ssub.s32 %s4359_s7, %s4296_s27  ;;  %s4363_s20 = smov (!%p2403_p3, %s259_s20), 15 }
  0xbe   : > { %v540_v42 = vld [vmem:[%s538_s30] ss:$8 sm:$0x30]  ;;  %s302_s21 = scalar_select %p301_p1, %s3514_s10, 0 }
  0xbf   : > { %v541_v43 = vor.u32 %v540_v42, %v539_v41  ;;  %s4297_s13 = sld [smem:[#allocation26_spill]]  ;;  %p344_p11 = scmp.gt.s32.totalorder %s3518_s12, 0 }
  0xc0   : > { %s284_s5 = scalar_lea.vmem [#allocation7], %s4363_s20  ;;  %s4365_s21 = smov (!%p2420_p8, %s302_s21), 15 }
  0xc1   : > { %v1071_v50 = vrot.slane %v541_v43, %v3213_v10  ;;  %v1075_v51 = vrot.slane %v541_v43, %v3215_v11  ;;  %v1079_v52 = vrot.slane %v541_v43, %v3219_v12  ;;  %v1083_v53 = vrot.slane %v541_v43, %v3221_v13  ;;  %v285_v56 = vld [vmem:[%s284_s5] sm:$0x1]  ;;  %s241_s28 = scalar_lea.vmem [#allocation7], %s4361_s23  ;;  %p2437_p2 = scmp.lt.s32.totalorder %s3518_s12, 15 }
  0xc2   : > { %v1087_v54 = vrot.slane %v541_v43, %v3224_v14  ;;  %v1091_v55 = vrot.slane %v541_v43, %v3226_v15  ;;  %v242_v61 = vld [vmem:[%s241_s28] sm:$0x1]  ;;  %s345_s11 = scalar_select %p344_p11, %s3518_s12, 0  ;;  %v1147_v0 = vrot.slane %v285_v56, 7 }
  0xc3   : > { %v1134_v57 = vsel %vm834_vm6, %v1128_v44, %v1071_v50  ;;  %v1135_v58 = vsel %vm834_vm6, %v1129_v45, %v1075_v51  ;;  %v1136_v59 = vsel %vm834_vm6, %v1130_v46, %v1079_v52  ;;  %v1137_v60 = vsel %vm834_vm6, %v1131_v47, %v1083_v53  ;;  %s327_s16 = scalar_lea.vmem [#allocation7], %s4365_s21  ;;  %p387_p5 = scmp.gt.s32.totalorder %s3532_s2, 0 }
  0xc4   : > { %v1138_v62 = vsel %vm834_vm6, %v1132_v48, %v1087_v54  ;;  %v1139_v63 = vsel %vm834_vm6, %v1133_v49, %v1091_v55  ;;  %v328_v1 = vld [vmem:[%s327_s16] sm:$0x1]  ;;  %p2454_p7 = scmp.lt.s32.totalorder %s3532_s2, 15  ;;  %s4367_s11 = smov (!%p2437_p2, %s345_s11), 15  ;;  %v1167_v3 = vsel %vm792_vm0, %v242_v61, %v1147_v0 }
  0xc5   : > { %1140 = vst [vmem:[%s4297_s13 + $0x30] sm:$0xff] %v1134_v57  ;;  %1141 = vst [vmem:[%s4297_s13 + $0x38] sm:$0xff] %v1135_v58  ;;  %v1150_v2 = vrot.slane %v328_v1, 6  ;;  %s4369_s2 = smov (!%p387_p5, %s3532_s2), 0  ;;  %p430_p6 = scmp.gt.s32.totalorder %s3536_s14, 0 }
  0xc6   : > { %1142 = vst [vmem:[%s4297_s13 + $0x40] sm:$0xff] %v1136_v59  ;;  %1143 = vst [vmem:[%s4297_s13 + $0x48] sm:$0xff] %v1137_v60  ;;  %s370_s3 = scalar_lea.vmem [#allocation7], %s4367_s11  ;;  %s4371_s2 = smov (!%p2454_p7, %s4369_s2), 15 }
  0xc7   : > { %1144 = vst [vmem:[%s4297_s13 + $0x50] sm:$0xff] %v1138_v62  ;;  %1145 = vst [vmem:[%s4297_s13 + $0x58] sm:$0xff] %v1139_v63  ;;  %v1168_v4 = vsel %vm799_vm1, %v1167_v3, %v1150_v2  ;;  %v371_v5 = vld [vmem:[%s370_s3] sm:$0x1]  ;;  %s431_s15 = scalar_select %p430_p6, %s3536_s14, 0 }
  0xc8   : > { %v1153_v6 = vrot.slane %v371_v5, 5  ;;  %p2471_p4 = scmp.lt.s32.totalorder %s3536_s14, 15  ;;  %s413_s17 = scalar_lea.vmem [#allocation7], %s4371_s2 }
  0xc9   : > { %v414_v7 = vld [vmem:[%s413_s17] sm:$0x1]  ;;  %p473_p9 = scmp.gt.s32.totalorder %s3616_s8, 0  ;;  %p2488_p12 = scmp.lt.s32.totalorder %s3616_s8, 15 }
  0xca   : > { %v1169_v8 = vsel %vm806_vm2, %v1168_v4, %v1153_v6  ;;  %s4373_s15 = smov (!%p2471_p4, %s431_s15), 15  ;;  %v1156_v9 = vrot.slane %v414_v7, 4  ;;  %p516_p0 = scmp.gt.s32.totalorder %s3620_s0, 0 }
  0xcb   : > { %s4375_s8 = smov (!%p473_p9, %s3616_s8), 0  ;;  %s456_s18 = scalar_lea.vmem [#allocation7], %s4373_s15 }
  0xcc   : > { %v1170_v16 = vsel %vm813_vm3, %v1169_v8, %v1156_v9  ;;  %v457_v17 = vld [vmem:[%s456_s18] sm:$0x1]  ;;  %s4377_s8 = smov (!%p2488_p12, %s4375_s8), 15  ;;  %p2505_p3 = scmp.lt.s32.totalorder %s3620_s0, 15 }
  0xcd   : > { %s517_s10 = scalar_select %p516_p0, %s3620_s0, 0  ;;  %v1159_v18 = vrot.slane %v457_v17, 3 }
  0xce   : > { %s499_s12 = scalar_lea.vmem [#allocation7], %s4377_s8  ;;  %s1176_s1 = sadd.s32 16, %s3153_s26 }
  0xcf   : > { %v500_v19 = vld [vmem:[%s499_s12] sm:$0x1]  ;;  %v1171_v20 = vsel %vm820_vm4, %v1170_v16, %v1159_v18  ;;  %s1219_s9 = sadd.s32 18, %s3153_s26  ;;  %s4379_s10 = smov (!%p2505_p3, %s517_s10), 15 }
  0xd0   : > { %v1162_v21 = vrot.slane %v500_v19, 2  ;;  %s1177_s2 = sld [smem:[#allocation3 + %s1176_s1]]  ;;  %s542_s6 = scalar_lea.vmem [#allocation7], %s4379_s10 }
  0xd1   : > { %s1220_s14 = sld [smem:[#allocation3 + %s1219_s9]]  ;;  %v543_v23 = vld [vmem:[%s542_s6] sm:$0x1]  ;;  %s1262_s25 = sadd.s32 20, %s3153_s26 }
  0xd2   : > { %v1172_v22 = vsel %vm827_vm5, %v1171_v20, %v1162_v21  ;;  %v1165_v24 = vrot.slane %v543_v23, 1  ;;  %s1263_s7 = sld [smem:[#allocation3 + %s1262_s25]]  ;;  %s1305_s23 = sadd.s32 22, %s3153_s26 }
  0xd3   : > { %s1306_s19 = sld [smem:[#allocation3 + %s1305_s23]]  ;;  %s1348_s4 = sadd.s32 24, %s3153_s26 }
  0xd4   : > { %v1173_v25 = vsel %vm834_vm6, %v1172_v22, %v1165_v24  ;;  %s1391_s24 = sadd.s32 26, %s3153_s26  ;;  %s3698_s27 = sld [smem:[#allocation3 + %s1348_s4]] }
  0xd5   : > { %1174 = vst [vmem:[%s4297_s13 + $0x60] sm:$0xff] %v1173_v25  ;;  %s3702_s22 = sld [smem:[#allocation3 + %s1391_s24]]  ;;  %s4258_s30 = sadd.s32 28, %s3153_s26 }
  0xd6   : > { %p1180_p1 = scmp.gt.s32.totalorder %s1177_s2, 0  ;;  %p2512_p8 = scmp.lt.s32.totalorder %s1177_s2, 15 }
  0xd7   : > { %p1223_p11 = scmp.gt.s32.totalorder %s1220_s14, 0  ;;  %p2529_p2 = scmp.lt.s32.totalorder %s1220_s14, 15 }
  0xd8   : > { %s4381_s2 = smov (!%p1180_p1, %s1177_s2), 0  ;;  %p1266_p5 = scmp.gt.s32.totalorder %s1263_s7, 0 }
  0xd9   : > { %s4383_s14 = smov (!%p1223_p11, %s1220_s14), 0  ;;  %s4385_s2 = smov (!%p2512_p8, %s4381_s2), 15 }
  0xda   : > { %s4387_s14 = smov (!%p2529_p2, %s4383_s14), 15  ;;  %s1193_s20 = sshra.s32 %s4385_s2, 3 }
  0xdb   : > { %s1196_s8 = sand.u32 7, %s4385_s2  ;;  %s2527_s0 = smul.u32 48, %s1193_s20 }
  0xdc   : > { %s1236_s21 = sshra.s32 %s4387_s14, 3  ;;  %s1239_s5 = sand.u32 7, %s4387_s14 }
  0xdd   : > { %s1267_s28 = scalar_select %p1266_p5, %s1263_s7, 0 }
  0xde   : > { %p2546_p7 = scmp.lt.s32.totalorder %s1263_s7, 15  ;;  %p1309_p6 = scmp.gt.s32.totalorder %s1306_s19, 0 }
  0xdf   : > { %s2544_s11 = smul.u32 48, %s1236_s21  ;;  %p2563_p4 = scmp.lt.s32.totalorder %s1306_s19, 15 }
  0xe0   : > { %s4389_s28 = smov (!%p2546_p7, %s1267_s28), 15  ;;  %s4391_s19 = smov (!%p1309_p6, %s1306_s19), 0 }
  0xe1   : > { %s1199_s16 = sadd.s32 %s2527_s0, %s1196_s8  ;;  %s1279_s3 = sshra.s32 %s4389_s28, 3 }
  0xe2   : > { %s1282_s15 = sand.u32 7, %s4389_s28  ;;  %s2561_s17 = smul.u32 48, %s1279_s3 }
  0xe3   : > { %s4393_s19 = smov (!%p2563_p4, %s4391_s19), 15  ;;  %s1200_s18 = scalar_lea.vmem %s3142_s29, %s1199_s16 [#allocation4] }
  0xe4   : > { %p1352_p9 = scmp.gt.s32.totalorder %s3698_s27, 0  ;;  %s1242_s10 = sadd.s32 %s2544_s11, %s1239_s5  ;;  %v1201_v26 = vld [vmem:[%s1200_s18] ss:$8 sm:$0xf] }
  0xe5   : > { %s1322_s12 = sshra.s32 %s4393_s19, 3  ;;  %s1285_s6 = sadd.s32 %s2561_s17, %s1282_s15  ;;  %v1202_v27 = vld [vmem:[%s1200_s18] ss:$8 sm:$0x30] }
  0xe6   : > { %p2580_p12 = scmp.lt.s32.totalorder %s3698_s27, 15  ;;  %s1325_s7 = sand.u32 7, %s4393_s19  ;;  %v1203_v31 = vor.u32 %v1202_v27, %v1201_v26 }
  0xe7   : > { %s2578_s20 = smul.u32 48, %s1322_s12  ;;  %s4395_s27 = smov (!%p1352_p9, %s3698_s27), 0 }
  0xe8   : > { %s1243_s8 = scalar_lea.vmem %s3142_s29, %s1242_s10 [#allocation4]  ;;  %p1395_p0 = scmp.gt.s32.totalorder %s3702_s22, 0  ;;  %v1522_v37 = vrot.slane %v1203_v31, %v3213_v10  ;;  %v1526_v39 = vrot.slane %v1203_v31, %v3215_v11  ;;  %v1530_v41 = vrot.slane %v1203_v31, %v3219_v12  ;;  %v1534_v43 = vrot.slane %v1203_v31, %v3221_v13 }
  0xe9   : > { %s1286_s0 = scalar_lea.vmem %s3142_s29, %s1285_s6 [#allocation4]  ;;  %s3725_s21 = sld [smem:[#allocation3 + %s4258_s30]]  ;;  %v1244_v28 = vld [vmem:[%s1243_s8] ss:$8 sm:$0xf]  ;;  %v1538_v45 = vrot.slane %v1203_v31, %v3224_v14  ;;  %v1542_v47 = vrot.slane %v1203_v31, %v3226_v15 }
  0xea   : > { %s1328_s3 = sadd.s32 %s2578_s20, %s1325_s7  ;;  %p2597_p3 = scmp.lt.s32.totalorder %s3702_s22, 15  ;;  %v1245_v29 = vld [vmem:[%s1243_s8] ss:$8 sm:$0x30] }
  0xeb   : > { %s4397_s27 = smov (!%p2580_p12, %s4395_s27), 15  ;;  %s4399_s22 = smov (!%p1395_p0, %s3702_s22), 0  ;;  %v1287_v30 = vld [vmem:[%s1286_s0] ss:$8 sm:$0xf]  ;;  %v1246_v32 = vor.u32 %v1245_v29, %v1244_v28 }
  0xec   : > { %s1365_s5 = sshra.s32 %s4397_s27, 3  ;;  %s1368_s11 = sand.u32 7, %s4397_s27  ;;  %v1288_v33 = vld [vmem:[%s1286_s0] ss:$8 sm:$0x30] }
  0xed   : > { %s1329_s16 = scalar_lea.vmem %s3142_s29, %s1328_s3 [#allocation4]  ;;  %s2595_s15 = smul.u32 48, %s1365_s5  ;;  %v3740_v34 = vor.u32 %v1288_v33, %v1287_v30  ;;  %v1553_v38 = vrot.slane %v1246_v32, %v3213_v10  ;;  %v1557_v40 = vrot.slane %v1246_v32, %v3215_v11  ;;  %v1561_v42 = vrot.slane %v1246_v32, %v3219_v12 }
  0xee   : > { %s4401_s22 = smov (!%p2597_p3, %s4399_s22), 15  ;;  %s4257_s12 = sadd.s32 30, %s3153_s26  ;;  %v1330_v35 = vld [vmem:[%s1329_s16] ss:$8 sm:$0xf]  ;;  %v1565_v44 = vrot.slane %v1246_v32, %v3221_v13  ;;  %v1569_v46 = vrot.slane %v1246_v32, %v3224_v14  ;;  %v1573_v48 = vrot.slane %v1246_v32, %v3226_v15 }
  0xef   : > { %s1371_s17 = sadd.s32 %s2595_s15, %s1368_s11  ;;  %p1438_p1 = scmp.gt.s32.totalorder %s3725_s21, 0  ;;  %v1331_v36 = vld [vmem:[%s1329_s16] ss:$8 sm:$0x30]  ;;  %v1584_v51 = vrot.slane %v3740_v34, %v3213_v10  ;;  %v1766_v53 = vsel %vm792_vm0, %v1522_v37, %v1553_v38  ;;  %v1767_v54 = vsel %vm792_vm0, %v1526_v39, %v1557_v40  ;;  %v1588_v55 = vrot.slane %v3740_v34, %v3215_v11 }
  0xf0   : > { %s1408_s18 = sshra.s32 %s4401_s22, 3  ;;  %s1372_s10 = scalar_lea.vmem %s3142_s29, %s1371_s17 [#allocation4]  ;;  %v3761_v49 = vor.u32 %v1331_v36, %v1330_v35  ;;  %v1592_v56 = vrot.slane %v3740_v34, %v3219_v12  ;;  %v1596_v57 = vrot.slane %v3740_v34, %v3221_v13  ;;  %v1600_v58 = vrot.slane %v3740_v34, %v3224_v14 }
  0xf1   : > { %s1411_s6 = sand.u32 7, %s4401_s22  ;;  %s2612_s7 = smul.u32 48, %s1408_s18  ;;  %v1373_v50 = vld [vmem:[%s1372_s10] ss:$8 sm:$0xf]  ;;  %v1768_v60 = vsel %vm792_vm0, %v1530_v41, %v1561_v42  ;;  %v1769_v61 = vsel %vm792_vm0, %v1534_v43, %v1565_v44  ;;  %v1770_v62 = vsel %vm792_vm0, %v1538_v45, %v1569_v46  ;;  %v1771_v63 = vsel %vm792_vm0, %v1542_v47, %v1573_v48 }
  0xf2   : > { %s1439_s20 = scalar_select %p1438_p1, %s3725_s21, 0  ;;  %v1374_v52 = vld [vmem:[%s1372_s10] ss:$8 sm:$0x30]  ;;  %v1615_v2 = vrot.slane %v3761_v49, %v3213_v10  ;;  %v1772_v3 = vsel %vm799_vm1, %v1766_v53, %v1584_v51  ;;  %v1604_v4 = vrot.slane %v3740_v34, %v3226_v15  ;;  %v1619_v5 = vrot.slane %v3761_v49, %v3215_v11 }
  0xf3   : > { %s1414_s8 = sadd.s32 %s2612_s7, %s1411_s6  ;;  %p2614_p8 = scmp.lt.s32.totalorder %s3725_s21, 15  ;;  %v1375_v0 = vor.u32 %v1374_v52, %v1373_v50  ;;  %v1623_v6 = vrot.slane %v3761_v49, %v3219_v12  ;;  %v1627_v7 = vrot.slane %v3761_v49, %v3221_v13  ;;  %v1631_v8 = vrot.slane %v3761_v49, %v3224_v14 }
  0xf4   : > { %s3755_s0 = sld [smem:[#allocation3 + %s4257_s12]]  ;;  %s1415_s3 = scalar_lea.vmem %s3142_s29, %s1414_s8 [#allocation4]  ;;  %v1773_v9 = vsel %vm799_vm1, %v1767_v54, %v1588_v55  ;;  %v1774_v16 = vsel %vm799_vm1, %v1768_v60, %v1592_v56  ;;  %v1775_v17 = vsel %vm799_vm1, %v1769_v61, %v1596_v57  ;;  %v1776_v18 = vsel %vm799_vm1, %v1770_v62, %v1600_v58 }
  0xf5   : > { %s4403_s20 = smov (!%p2614_p8, %s1439_s20), 15  ;;  %s1178_s21 = sadd.s32 1, %s1176_s1  ;;  %v1416_v59 = vld [vmem:[%s1415_s3] ss:$8 sm:$0xf]  ;;  %v1635_v20 = vrot.slane %v3761_v49, %v3226_v15  ;;  %v1646_v23 = vrot.slane %v1375_v0, %v3213_v10  ;;  %v1778_v24 = vsel %vm806_vm2, %v1772_v3, %v1615_v2  ;;  %v1650_v25 = vrot.slane %v1375_v0, %v3215_v11 }
  0xf6   : > { %s1221_s5 = sadd.s32 1, %s1219_s9  ;;  %s1451_s11 = sshra.s32 %s4403_s20, 3  ;;  %v1417_v1 = vld [vmem:[%s1415_s3] ss:$8 sm:$0x30]  ;;  %v1777_v26 = vsel %vm799_vm1, %v1771_v63, %v1604_v4  ;;  %v1779_v27 = vsel %vm806_vm2, %v1773_v9, %v1619_v5  ;;  %v1780_v28 = vsel %vm806_vm2, %v1774_v16, %v1623_v6  ;;  %v1781_v29 = vsel %vm806_vm2, %v1775_v17, %v1627_v7 }
  0xf7   : > { %s1454_s16 = sand.u32 7, %s4403_s20  ;;  %s2629_s15 = smul.u32 48, %s1451_s11  ;;  %v1418_v19 = vor.u32 %v1417_v1, %v1416_v59  ;;  %v1782_v30 = vsel %vm806_vm2, %v1776_v18, %v1631_v8  ;;  %v1654_v31 = vrot.slane %v1375_v0, %v3219_v12  ;;  %v1658_v32 = vrot.slane %v1375_v0, %v3221_v13 }
  0xf8   : > { %s3795_s1 = sld [smem:[#allocation3 + %s1178_s21]]  ;;  %v1662_v33 = vrot.slane %v1375_v0, %v3224_v14  ;;  %v1666_v34 = vrot.slane %v1375_v0, %v3226_v15  ;;  %v1783_v38 = vsel %vm806_vm2, %v1777_v26, %v1635_v20  ;;  %v1784_v39 = vsel %vm813_vm3, %v1778_v24, %v1646_v23 }
  0xf9   : > { %s1457_s9 = sadd.s32 %s2629_s15, %s1454_s16  ;;  %s3814_s18 = sld [smem:[#allocation3 + %s1221_s5]]  ;;  %v1677_v36 = vrot.slane %v1418_v19, %v3213_v10  ;;  %v1681_v37 = vrot.slane %v1418_v19, %v3215_v11  ;;  %v1785_v40 = vsel %vm813_vm3, %v1779_v27, %v1650_v25  ;;  %v1685_v41 = vrot.slane %v1418_v19, %v3219_v12 }
  0xfa   : > { %p1481_p11 = scmp.gt.s32.totalorder %s3755_s0, 0  ;;  %p2631_p2 = scmp.lt.s32.totalorder %s3755_s0, 15  ;;  %v1689_v42 = vrot.slane %v1418_v19, %v3221_v13  ;;  %v1693_v43 = vrot.slane %v1418_v19, %v3224_v14  ;;  %v1697_v44 = vrot.slane %v1418_v19, %v3226_v15  ;;  %v1786_v45 = vsel %vm813_vm3, %v1780_v28, %v1654_v31 }
  0xfb   : > { %s1458_s17 = scalar_lea.vmem %s3142_s29, %s1457_s9 [#allocation4]  ;;  %v1787_v46 = vsel %vm813_vm3, %v1781_v29, %v1658_v32  ;;  %v1788_v47 = vsel %vm813_vm3, %v1782_v30, %v1662_v33  ;;  %v1789_v48 = vsel %vm813_vm3, %v1783_v38, %v1666_v34  ;;  %v1790_v50 = vsel %vm820_vm4, %v1784_v39, %v1677_v36  ;;  %s1264_s5 = sadd.s32 1, %s1262_s25 }
  0xfc   : > { %v1459_v21 = vld [vmem:[%s1458_s17] ss:$8 sm:$0xf]  ;;  %s1482_s10 = scalar_select %p1481_p11, %s3755_s0, 0  ;;  %v1791_v52 = vsel %vm820_vm4, %v1785_v40, %v1681_v37  ;;  %v1792_v57 = vsel %vm820_vm4, %v1786_v45, %v1685_v41  ;;  %v1793_v58 = vsel %vm820_vm4, %v1787_v46, %v1689_v42  ;;  %v1794_v59 = vsel %vm820_vm4, %v1788_v47, %v1693_v43 }
  0xfd   : > { %v1460_v22 = vld [vmem:[%s1458_s17] ss:$8 sm:$0x30]  ;;  %v1795_v60 = vsel %vm820_vm4, %v1789_v48, %v1697_v44  ;;  %s3887_s11 = sld [smem:[#allocation3 + %s1264_s5]]  ;;  %s1307_s16 = sadd.s32 1, %s1305_s23 }
  0xfe   : > { %p1184_p5 = scmp.gt.s32.totalorder %s3795_s1, 0  ;;  %p2517_p7 = scmp.lt.s32.totalorder %s3795_s1, 15  ;;  %v1461_v35 = vor.u32 %v1460_v22, %v1459_v21 }
  0xff   : > { %s4405_s10 = smov (!%p2631_p2, %s1482_s10), 15  ;;  %p1227_p6 = scmp.gt.s32.totalorder %s3814_s18, 0 }
 0x100   : > { %s1185_s6 = scalar_select %p1184_p5, %s3795_s1, 0  ;;  %v1708_v49 = vrot.slane %v1461_v35, %v3213_v10  ;;  %v1712_v51 = vrot.slane %v1461_v35, %v3215_v11  ;;  %v1716_v53 = vrot.slane %v1461_v35, %v3219_v12  ;;  %v1720_v54 = vrot.slane %v1461_v35, %v3221_v13 }
 0x101   : > { %s1494_s7 = sshra.s32 %s4405_s10, 3  ;;  %s1497_s8 = sand.u32 7, %s4405_s10  ;;  %v1724_v55 = vrot.slane %v1461_v35, %v3224_v14  ;;  %v1728_v56 = vrot.slane %v1461_v35, %v3226_v15 }
 0x102   : > { %s2646_s0 = smul.u32 48, %s1494_s7  ;;  %s4407_s6 = smov (!%p2517_p7, %s1185_s6), 15  ;;  %v1796_v0 = vsel %vm827_vm5, %v1790_v50, %v1708_v49  ;;  %v1797_v1 = vsel %vm827_vm5, %v1791_v52, %v1712_v51  ;;  %v1798_v2 = vsel %vm827_vm5, %v1792_v57, %v1716_v53  ;;  %v1799_v3 = vsel %vm827_vm5, %v1793_v58, %v1720_v54 }
 0x103   : > { %p2534_p4 = scmp.lt.s32.totalorder %s3814_s18, 15  ;;  %v1800_v4 = vsel %vm827_vm5, %v1794_v59, %v1724_v55  ;;  %v1801_v5 = vsel %vm827_vm5, %v1795_v60, %v1728_v56  ;;  %s1308_s23 = sld [smem:[#allocation3 + %s1307_s16]] }
 0x104   : > { %s1500_s3 = sadd.s32 %s2646_s0, %s1497_s8  ;;  %s1204_s15 = sshra.s32 %s4407_s6, 3 }
 0x105   : > { %s1501_s21 = scalar_lea.vmem %s3142_s29, %s1500_s3 [#allocation4]  ;;  %s3912_s1 = ssub.s32 %s4407_s6, %s4385_s2 }
 0x106   : > { %v1502_v61 = vld [vmem:[%s1501_s21] ss:$8 sm:$0xf]  ;;  %s1228_s25 = scalar_select %p1227_p6, %s3814_s18, 0 }
 0x107   : > { %v1503_v62 = vld [vmem:[%s1501_s21] ss:$8 sm:$0x30]  ;;  %s1207_s9 = sand.u32 7, %s4407_s6  ;;  %p1270_p9 = scmp.gt.s32.totalorder %s3887_s11, 0 }
 0x108   : > { %v1504_v63 = vor.u32 %v1503_v62, %v1502_v61  ;;  %s4409_s25 = smov (!%p2534_p4, %s1228_s25), 15  ;;  %s1350_s7 = sadd.s32 1, %s1348_s4 }
 0x109   : > { %s1247_s17 = sshra.s32 %s4409_s25, 3  ;;  %s2528_s8 = smul.u32 48, %s1204_s15 }
 0x10a   : > { %v1739_v6 = vrot.slane %v1504_v63, %v3213_v10  ;;  %v1743_v7 = vrot.slane %v1504_v63, %v3215_v11  ;;  %v1747_v8 = vrot.slane %v1504_v63, %v3219_v12  ;;  %v1751_v9 = vrot.slane %v1504_v63, %v3221_v13  ;;  %s1250_s0 = sand.u32 7, %s4409_s25  ;;  %s2545_s18 = smul.u32 48, %s1247_s17 }
 0x10b   : > { %v1755_v16 = vrot.slane %v1504_v63, %v3224_v14  ;;  %v1759_v17 = vrot.slane %v1504_v63, %v3226_v15  ;;  %p2551_p12 = scmp.lt.s32.totalorder %s3887_s11, 15  ;;  %s1351_s3 = sld [smem:[#allocation3 + %s1350_s7]] }
 0x10c   : > { %v1802_v18 = vsel %vm834_vm6, %v1796_v0, %v1739_v6  ;;  %v1803_v19 = vsel %vm834_vm6, %v1797_v1, %v1743_v7  ;;  %v1804_v20 = vsel %vm834_vm6, %v1798_v2, %v1747_v8  ;;  %v1805_v21 = vsel %vm834_vm6, %v1799_v3, %v1751_v9  ;;  %s1393_s21 = sadd.s32 1, %s1391_s24  ;;  %s4411_s11 = smov (!%p1270_p9, %s3887_s11), 0 }
 0x10d   : > { %2648 = vst [vmem:[%s4297_s13 + $0x68] sm:$0xff] %v1802_v18  ;;  %2649 = vst [vmem:[%s4297_s13 + $0x70] sm:$0xff] %v1803_v19  ;;  %v1806_v22 = vsel %vm834_vm6, %v1800_v4, %v1755_v16  ;;  %v1807_v23 = vsel %vm834_vm6, %v1801_v5, %v1759_v17  ;;  %p1313_p0 = scmp.gt.s32.totalorder %s1308_s23, 0  ;;  %p2568_p3 = scmp.lt.s32.totalorder %s1308_s23, 15 }
 0x10e   : > { %2650 = vst [vmem:[%s4297_s13 + $0x78] sm:$0xff] %v1804_v20  ;;  %2651 = vst [vmem:[%s4297_s13 + $0x80] sm:$0xff] %v1805_v21  ;;  %s4413_s11 = smov (!%p2551_p12, %s4411_s11), 15  ;;  %s3927_s6 = sld [smem:[#allocation3 + %s1393_s21]] }
 0x10f   : > { %2652 = vst [vmem:[%s4297_s13 + $0x88] sm:$0xff] %v1806_v22  ;;  %2653 = vst [vmem:[%s4297_s13 + $0x90] sm:$0xff] %v1807_v23  ;;  %s4415_s23 = smov (!%p1313_p0, %s1308_s23), 0  ;;  %s1290_s2 = sshra.s32 %s4413_s11, 3 }
 0x110   : > { %s1293_s4 = sand.u32 7, %s4413_s11  ;;  %s2562_s5 = smul.u32 48, %s1290_s2 }
 0x111   : > { %s4417_s23 = smov (!%p2568_p3, %s4415_s23), 15  ;;  %s1210_s24 = sadd.s32 %s2528_s8, %s1207_s9 }
 0x112   : > { %p1356_p1 = scmp.gt.s32.totalorder %s1351_s3, 0  ;;  %s1253_s16 = sadd.s32 %s2545_s18, %s1250_s0 }
 0x113   : > { %s1333_s15 = sshra.s32 %s4417_s23, 3  ;;  %s1296_s17 = sadd.s32 %s2562_s5, %s1293_s4 }
 0x114   : > { %p2585_p8 = scmp.lt.s32.totalorder %s1351_s3, 15  ;;  %s1336_s7 = sand.u32 7, %s4417_s23 }
 0x115   : > { %s2579_s12 = smul.u32 48, %s1333_s15  ;;  %s4419_s3 = smov (!%p1356_p1, %s1351_s3), 0 }
 0x116   : > { %s1211_s21 = scalar_lea.vmem %s3142_s29, %s1210_s24 [#allocation4]  ;;  %p1399_p11 = scmp.gt.s32.totalorder %s3927_s6, 0 }
 0x117   : > { %s1254_s30 = scalar_lea.vmem %s3142_s29, %s1253_s16 [#allocation4]  ;;  %s1297_s2 = scalar_lea.vmem %s3142_s29, %s1296_s17 [#allocation4]  ;;  %v1212_v24 = vld [vmem:[%s1211_s21] ss:$8 sm:$0xf] }
 0x118   : > { %s1339_s13 = sadd.s32 %s2579_s12, %s1336_s7  ;;  %p2602_p2 = scmp.lt.s32.totalorder %s3927_s6, 15  ;;  %v1213_v25 = vld [vmem:[%s1211_s21] ss:$8 sm:$0x30] }
 0x119   : > { %s4421_s3 = smov (!%p2585_p8, %s4419_s3), 15  ;;  %s4423_s6 = smov (!%p1399_p11, %s3927_s6), 0  ;;  %v1255_v26 = vld [vmem:[%s1254_s30] ss:$8 sm:$0xf]  ;;  %v1214_v29 = vor.u32 %v1213_v25, %v1212_v24 }
 0x11a   : > { %s1376_s9 = sshra.s32 %s4421_s3, 3  ;;  %s1379_s8 = sand.u32 7, %s4421_s3  ;;  %v1256_v27 = vld [vmem:[%s1254_s30] ss:$8 sm:$0x30] }
 0x11b   : > { %s2596_s0 = smul.u32 48, %s1376_s9  ;;  %s4298_s18 = sadd.s32 28, %s3153_s26  ;;  %v1298_v28 = vld [vmem:[%s1297_s2] ss:$8 sm:$0xf]  ;;  %v1257_v30 = vor.u32 %v1256_v27, %v1255_v26  ;;  %v1821_v35 = vrot.slane %v1214_v29, %v3213_v10  ;;  %v1825_v37 = vrot.slane %v1214_v29, %v3215_v11  ;;  %v1829_v39 = vrot.slane %v1214_v29, %v3219_v12 }
 0x11c   : > { %s1436_s4 = sadd.s32 1, %s4298_s18  ;;  %s4425_s6 = smov (!%p2602_p2, %s4423_s6), 15  ;;  %v1299_v31 = vld [vmem:[%s1297_s2] ss:$8 sm:$0x30]  ;;  %v1833_v40 = vrot.slane %v1214_v29, %v3221_v13  ;;  %v1837_v41 = vrot.slane %v1214_v29, %v3224_v14  ;;  %v1841_v42 = vrot.slane %v1214_v29, %v3226_v15 }
 0x11d   : > { %s1340_s12 = scalar_lea.vmem %s3142_s29, %s1339_s13 [#allocation4]  ;;  %s3949_s5 = sld [smem:[#allocation3 + %s1436_s4]]  ;;  %v3961_v32 = vor.u32 %v1299_v31, %v1298_v28  ;;  %v1852_v36 = vrot.slane %v1257_v30, %v3213_v10  ;;  %v1856_v38 = vrot.slane %v1257_v30, %v3215_v11  ;;  %v1860_v43 = vrot.slane %v1257_v30, %v3219_v12 }
 0x11e   : > { %s1382_s24 = sadd.s32 %s2596_s0, %s1379_s8  ;;  %s1419_s16 = sshra.s32 %s4425_s6, 3  ;;  %v1341_v33 = vld [vmem:[%s1340_s12] ss:$8 sm:$0xf]  ;;  %v1864_v44 = vrot.slane %v1257_v30, %v3221_v13  ;;  %v1868_v45 = vrot.slane %v1257_v30, %v3224_v14  ;;  %v1872_v46 = vrot.slane %v1257_v30, %v3226_v15 }
 0x11f   : > { %s3954_s30 = ssub.s32 %s4409_s25, %s4387_s14  ;;  %s3958_s15 = ssub.s32 %s4413_s11, %s4389_s28  ;;  %v1342_v34 = vld [vmem:[%s1340_s12] ss:$8 sm:$0x30]  ;;  %v1883_v49 = vrot.slane %v3961_v32, %v3213_v10  ;;  %v2065_v51 = vsel %vm792_vm0, %v1821_v35, %v1852_v36  ;;  %v2066_v52 = vsel %vm792_vm0, %v1825_v37, %v1856_v38  ;;  %v1887_v53 = vrot.slane %v3961_v32, %v3215_v11 }
 0x120   : > { %s1422_s17 = sand.u32 7, %s4425_s6  ;;  %s2613_s7 = smul.u32 48, %s1419_s16  ;;  %v3987_v47 = vor.u32 %v1342_v34, %v1341_v33  ;;  %v1891_v54 = vrot.slane %v3961_v32, %v3219_v12  ;;  %v1895_v55 = vrot.slane %v3961_v32, %v3221_v13  ;;  %v1899_v56 = vrot.slane %v3961_v32, %v3224_v14 }
 0x121   : > { %s1383_s13 = scalar_lea.vmem %s3142_s29, %s1382_s24 [#allocation4]  ;;  %s4299_s21 = sadd.s32 30, %s3153_s26  ;;  %v2067_v58 = vsel %vm792_vm0, %v1829_v39, %v1860_v43  ;;  %v2068_v59 = vsel %vm792_vm0, %v1833_v40, %v1864_v44  ;;  %v2069_v60 = vsel %vm792_vm0, %v1837_v41, %v1868_v45  ;;  %v2070_v61 = vsel %vm792_vm0, %v1841_v42, %v1872_v46 }
 0x122   : > { %s1479_s9 = sadd.s32 1, %s4299_s21  ;;  %s1425_s18 = sadd.s32 %s2613_s7, %s1422_s17  ;;  %v1384_v48 = vld [vmem:[%s1383_s13] ss:$8 sm:$0xf]  ;;  %v1914_v0 = vrot.slane %v3987_v47, %v3213_v10  ;;  %v2071_v1 = vsel %vm799_vm1, %v2065_v51, %v1883_v49  ;;  %v1903_v2 = vrot.slane %v3961_v32, %v3226_v15  ;;  %v1918_v3 = vrot.slane %v3987_v47, %v3215_v11 }
 0x123   : > { %s3966_s2 = sld [smem:[#allocation3 + %s1479_s9]]  ;;  %p1442_p5 = scmp.gt.s32.totalorder %s3949_s5, 0  ;;  %v1385_v50 = vld [vmem:[%s1383_s13] ss:$8 sm:$0x30]  ;;  %v1922_v4 = vrot.slane %v3987_v47, %v3219_v12  ;;  %v1926_v5 = vrot.slane %v3987_v47, %v3221_v13  ;;  %v1930_v6 = vrot.slane %v3987_v47, %v3224_v14  ;;  %v2072_v7 = vsel %vm799_vm1, %v2066_v52, %v1887_v53 }
 0x124   : > { %p1189_p7 = scmp.gt.s32.totalorder %s3912_s1, 0  ;;  %s1426_s26 = scalar_lea.vmem %s3142_s29, %s1425_s18 [#allocation4]  ;;  %v1386_v62 = vor.u32 %v1385_v50, %v1384_v48  ;;  %v2073_v8 = vsel %vm799_vm1, %v2067_v58, %v1891_v54  ;;  %v2074_v9 = vsel %vm799_vm1, %v2068_v59, %v1895_v55  ;;  %v2075_v16 = vsel %vm799_vm1, %v2069_v60, %v1899_v56 }
 0x125   : > { %s3985_s14 = ssub.s32 %s4417_s23, %s4393_s19  ;;  %p2619_p6 = scmp.lt.s32.totalorder %s3949_s5, 15  ;;  %v1427_v57 = vld [vmem:[%s1426_s26] ss:$8 sm:$0xf]  ;;  %v1934_v18 = vrot.slane %v3987_v47, %v3226_v15  ;;  %v2077_v20 = vsel %vm806_vm2, %v2071_v1, %v1914_v0  ;;  %v2076_v22 = vsel %vm799_vm1, %v2070_v61, %v1903_v2  ;;  %v2078_v23 = vsel %vm806_vm2, %v2072_v7, %v1918_v3 }
 0x126   : > { %s1443_s28 = scalar_select %p1442_p5, %s3949_s5, 0  ;;  %v1428_v63 = vld [vmem:[%s1426_s26] ss:$8 sm:$0x30]  ;;  %v1945_v19 = vrot.slane %v1386_v62, %v3213_v10  ;;  %v1949_v21 = vrot.slane %v1386_v62, %v3215_v11  ;;  %v2079_v24 = vsel %vm806_vm2, %v2073_v8, %v1922_v4  ;;  %v2080_v25 = vsel %vm806_vm2, %v2074_v9, %v1926_v5 }
 0x127   : > { %p2522_p4 = scmp.lt.s32.totalorder %s3912_s1, 15  ;;  %p1232_p0 = scmp.gt.s32.totalorder %s3954_s30, 0  ;;  %v1429_v17 = vor.u32 %v1428_v63, %v1427_v57  ;;  %v2081_v26 = vsel %vm806_vm2, %v2075_v16, %v1930_v6  ;;  %v1953_v29 = vrot.slane %v1386_v62, %v3219_v12  ;;  %v1957_v30 = vrot.slane %v1386_v62, %v3221_v13 }
 0x128   : > { %s4009_s19 = scalar_select %p1189_p7, %s3912_s1, 0  ;;  %v1961_v31 = vrot.slane %v1386_v62, %v3224_v14  ;;  %v1965_v32 = vrot.slane %v1386_v62, %v3226_v15  ;;  %v2082_v36 = vsel %vm806_vm2, %v2076_v22, %v1934_v18  ;;  %v2083_v37 = vsel %vm813_vm3, %v2077_v20, %v1945_v19 }
 0x129   : > { %s4427_s28 = smov (!%p2619_p6, %s1443_s28), 15  ;;  %p1485_p9 = scmp.gt.s32.totalorder %s3966_s2, 0  ;;  %v1976_v34 = vrot.slane %v1429_v17, %v3213_v10  ;;  %v1980_v35 = vrot.slane %v1429_v17, %v3215_v11  ;;  %v2084_v38 = vsel %vm813_vm3, %v2078_v23, %v1949_v21  ;;  %v1984_v39 = vrot.slane %v1429_v17, %v3219_v12 }
 0x12a   : > { %p2636_p12 = scmp.lt.s32.totalorder %s3966_s2, 15  ;;  %s1462_s25 = sshra.s32 %s4427_s28, 3  ;;  %v1988_v40 = vrot.slane %v1429_v17, %v3221_v13  ;;  %v1992_v41 = vrot.slane %v1429_v17, %v3224_v14  ;;  %v1996_v42 = vrot.slane %v1429_v17, %v3226_v15  ;;  %v2085_v43 = vsel %vm813_vm3, %v2079_v24, %v1953_v29 }
 0x12b   : > { %s1465_s11 = sand.u32 7, %s4427_s28  ;;  %s2630_s23 = smul.u32 48, %s1462_s25  ;;  %v2086_v44 = vsel %vm813_vm3, %v2080_v25, %v1957_v30  ;;  %v2087_v45 = vsel %vm813_vm3, %v2081_v26, %v1961_v31  ;;  %v2088_v46 = vsel %vm813_vm3, %v2082_v36, %v1965_v32  ;;  %v2089_v48 = vsel %vm820_vm4, %v2083_v37, %v1976_v34 }
 0x12c   : > { %s1486_s8 = scalar_select %p1485_p9, %s3966_s2, 0  ;;  %v2090_v50 = vsel %vm820_vm4, %v2084_v38, %v1980_v35  ;;  %v2091_v55 = vsel %vm820_vm4, %v2085_v43, %v1984_v39  ;;  %v2092_v56 = vsel %vm820_vm4, %v2086_v44, %v1988_v40  ;;  %v2093_v57 = vsel %vm820_vm4, %v2087_v45, %v1992_v41 }
 0x12d   : > { %s1468_s0 = sadd.s32 %s2630_s23, %s1465_s11  ;;  %p2539_p3 = scmp.lt.s32.totalorder %s3954_s30, 15  ;;  %v2094_v58 = vsel %vm820_vm4, %v2088_v46, %v1996_v42 }
 0x12e   : > { %s1469_s4 = scalar_lea.vmem %s3142_s29, %s1468_s0 [#allocation4]  ;;  %p1275_p1 = scmp.gt.s32.totalorder %s3958_s15, 0 }
 0x12f   : > { %v1470_v27 = vld [vmem:[%s1469_s4] ss:$8 sm:$0xf]  ;;  %s4061_s12 = ssub.s32 %s4421_s3, %s4397_s27  ;;  %s4065_s5 = ssub.s32 %s4425_s6, %s4401_s22 }
 0x130   : > { %v1471_v28 = vld [vmem:[%s1469_s4] ss:$8 sm:$0x30]  ;;  %s4429_s8 = smov (!%p2636_p12, %s1486_s8), 15  ;;  %s4431_s19 = smov (!%p2522_p4, %s4009_s19), 15 }
 0x131   : > { %v1472_v33 = vor.u32 %v1471_v28, %v1470_v27  ;;  %s1505_s27 = sshra.s32 %s4429_s8, 3  ;;  %s1508_s22 = sand.u32 7, %s4429_s8 }
 0x132   : > { %s2647_s3 = smul.u32 48, %s1505_s27  ;;  %p2556_p8 = scmp.lt.s32.totalorder %s3958_s15, 15 }
 0x133   : > { %v2007_v47 = vrot.slane %v1472_v33, %v3213_v10  ;;  %v2011_v49 = vrot.slane %v1472_v33, %v3215_v11  ;;  %s1233_s1 = scalar_select %p1232_p0, %s3954_s30, 0  ;;  %v2015_v51 = vrot.slane %v1472_v33, %v3219_v12  ;;  %v2019_v52 = vrot.slane %v1472_v33, %v3221_v13 }
 0x134   : > { %s1511_s6 = sadd.s32 %s2647_s3, %s1508_s22  ;;  %v2023_v53 = vrot.slane %v1472_v33, %v3224_v14  ;;  %v2027_v54 = vrot.slane %v1472_v33, %v3226_v15  ;;  %p1318_p11 = scmp.gt.s32.totalorder %s3985_s14, 0 }
 0x135   : > { %s1512_s24 = scalar_lea.vmem %s3142_s29, %s1511_s6 [#allocation4]  ;;  %s4111_s16 = ssub.s32 %s4427_s28, %s4403_s20  ;;  %v2095_v62 = vsel %vm827_vm5, %v2089_v48, %v2007_v47  ;;  %v2096_v63 = vsel %vm827_vm5, %v2090_v50, %v2011_v49  ;;  %v2097_v0 = vsel %vm827_vm5, %v2091_v55, %v2015_v51  ;;  %v2098_v1 = vsel %vm827_vm5, %v2092_v56, %v2019_v52 }
 0x136   : > { %v1513_v59 = vld [vmem:[%s1512_s24] ss:$8 sm:$0xf]  ;;  %s4115_s17 = ssub.s32 %s4429_s8, %s4405_s10  ;;  %s4433_s1 = smov (!%p2539_p3, %s1233_s1), 15  ;;  %v2099_v2 = vsel %vm827_vm5, %v2093_v57, %v2023_v53  ;;  %v2100_v3 = vsel %vm827_vm5, %v2094_v58, %v2027_v54 }
 0x137   : > { %v1514_v60 = vld [vmem:[%s1512_s24] ss:$8 sm:$0x30]  ;;  %s1276_s29 = scalar_select %p1275_p1, %s3958_s15, 0 }
 0x138   : > { %v1515_v61 = vor.u32 %v1514_v60, %v1513_v59  ;;  %s4300_s20 = sld [smem:[#allocation26_spill]]  ;;  %p2573_p2 = scmp.lt.s32.totalorder %s3985_s14, 15 }
 0x139   : > { %s1258_s10 = scalar_lea.vmem [#allocation7], %s4433_s1  ;;  %s4435_s29 = smov (!%p2556_p8, %s1276_s29), 15 }
 0x13a   : > { %v2038_v4 = vrot.slane %v1515_v61, %v3213_v10  ;;  %v2042_v5 = vrot.slane %v1515_v61, %v3215_v11  ;;  %v2046_v6 = vrot.slane %v1515_v61, %v3219_v12  ;;  %v2050_v7 = vrot.slane %v1515_v61, %v3221_v13  ;;  %v1259_v10 = vld [vmem:[%s1258_s10] sm:$0x1]  ;;  %s1215_s30 = scalar_lea.vmem [#allocation7], %s4431_s19  ;;  %p1361_p5 = scmp.gt.s32.totalorder %s4061_s12, 0 }
 0x13b   : > { %v2054_v8 = vrot.slane %v1515_v61, %v3224_v14  ;;  %v2058_v9 = vrot.slane %v1515_v61, %v3226_v15  ;;  %v1216_v14 = vld [vmem:[%s1215_s30] sm:$0x1]  ;;  %s1319_s7 = scalar_select %p1318_p11, %s3985_s14, 0  ;;  %v2114_v18 = vrot.slane %v1259_v10, 7 }
 0x13c   : > { %v2101_v11 = vsel %vm834_vm6, %v2095_v62, %v2038_v4  ;;  %v2102_v12 = vsel %vm834_vm6, %v2096_v63, %v2042_v5  ;;  %v2103_v13 = vsel %vm834_vm6, %v2097_v0, %v2046_v6  ;;  %v2104_v16 = vsel %vm834_vm6, %v2098_v1, %v2050_v7  ;;  %s1301_s15 = scalar_lea.vmem [#allocation7], %s4435_s29  ;;  %p2590_p7 = scmp.lt.s32.totalorder %s4061_s12, 15 }
 0x13d   : > { %v2105_v15 = vsel %vm834_vm6, %v2099_v2, %v2054_v8  ;;  %v2106_v17 = vsel %vm834_vm6, %v2100_v3, %v2058_v9  ;;  %v1302_v19 = vld [vmem:[%s1301_s15] sm:$0x1]  ;;  %s4437_s7 = smov (!%p2573_p2, %s1319_s7), 15  ;;  %v2134_v21 = vsel %vm792_vm0, %v1216_v14, %v2114_v18  ;;  %p1404_p6 = scmp.gt.s32.totalorder %s4065_s5, 0 }
 0x13e   : > { %2654 = vst [vmem:[%s4300_s20 + $0x98] sm:$0xff] %v2101_v11  ;;  %2655 = vst [vmem:[%s4300_s20 + $0xa0] sm:$0xff] %v2102_v12  ;;  %s1362_s13 = scalar_select %p1361_p5, %s4061_s12, 0  ;;  %v2117_v20 = vrot.slane %v1302_v19, 6 }
 0x13f   : > { %2656 = vst [vmem:[%s4300_s20 + $0xa8] sm:$0xff] %v2103_v13  ;;  %2657 = vst [vmem:[%s4300_s20 + $0xb0] sm:$0xff] %v2104_v16  ;;  %s1344_s21 = scalar_lea.vmem [#allocation7], %s4437_s7  ;;  %p2607_p4 = scmp.lt.s32.totalorder %s4065_s5, 15 }
 0x140   : > { %2658 = vst [vmem:[%s4300_s20 + $0xb8] sm:$0xff] %v2105_v15  ;;  %2659 = vst [vmem:[%s4300_s20 + $0xc0] sm:$0xff] %v2106_v17  ;;  %v1345_v22 = vld [vmem:[%s1344_s21] sm:$0x1]  ;;  %v2135_v23 = vsel %vm799_vm1, %v2134_v21, %v2117_v20  ;;  %s4439_s13 = smov (!%p2590_p7, %s1362_s13), 15  ;;  %s4441_s5 = smov (!%p1404_p6, %s4065_s5), 0 }
 0x141   : > { %v2120_v24 = vrot.slane %v1345_v22, 5  ;;  %p1447_p9 = scmp.gt.s32.totalorder %s4111_s16, 0  ;;  %s1387_s9 = scalar_lea.vmem [#allocation7], %s4439_s13 }
 0x142   : > { %v1388_v26 = vld [vmem:[%s1387_s9] sm:$0x1]  ;;  %s4443_s5 = smov (!%p2607_p4, %s4441_s5), 15  ;;  %s4301_s2 = sld [smem:[#allocation17_spill]] }
 0x143   : > { %v2136_v25 = vsel %vm806_vm2, %v2135_v23, %v2120_v24  ;;  %s1448_s18 = scalar_select %p1447_p9, %s4111_s16, 0  ;;  %v2123_v27 = vrot.slane %v1388_v26, 4 }
 0x144   : > { %p2624_p12 = scmp.lt.s32.totalorder %s4111_s16, 15  ;;  %s1430_s26 = scalar_lea.vmem [#allocation7], %s4443_s5 }
 0x145   : > { %v1431_v28 = vld [vmem:[%s1430_s26] sm:$0x1]  ;;  %p1490_p0 = scmp.gt.s32.totalorder %s4115_s17, 0  ;;  %p2641_p3 = scmp.lt.s32.totalorder %s4115_s17, 15  ;;  %v2137_v29 = vsel %vm813_vm3, %v2136_v25, %v2123_v27 }
 0x146   : > { %s4445_s18 = smov (!%p2624_p12, %s1448_s18), 15  ;;  %v2126_v30 = vrot.slane %v1431_v28, 3  ;;  %s4302_s14 = sld [smem:[#allocation24_spill]] }
 0x147   : > { %s4447_s17 = smov (!%p1490_p0, %s4115_s17), 0  ;;  %s1473_s28 = scalar_lea.vmem [#allocation7], %s4445_s18 }
 0x148   : > { %v2138_v31 = vsel %vm820_vm4, %v2137_v29, %v2126_v30  ;;  %v1474_v32 = vld [vmem:[%s1473_s28] sm:$0x1]  ;;  %s4449_s17 = smov (!%p2641_p3, %s4447_s17), 15  ;;  %s2765_s25 = smul.u32 3328, %s4301_s2 }
 0x149   : > { %v2129_v33 = vrot.slane %v1474_v32, 2  ;;  %s2159_s11 = sshll.u32 %s4300_s20, 4  ;;  %s1516_s23 = scalar_lea.vmem [#allocation7], %s4449_s17  ;;  %s4180_s11 = int_to_ptr.vmem [resolvable:$true] %s2159_s11 }
 0x14a   : > { %v1517_v34 = vld [vmem:[%s1516_s23] sm:$0x1]  ;;  %s4304_s4 = sld [smem:[#allocation29_spill]]  ;;  %s2908_s27 = scalar_lea.vmem %s4180_s11, 3328 }
 0x14b   : > { %v2139_v35 = vsel %vm827_vm5, %v2138_v31, %v2129_v33  ;;  %v2132_v36 = vrot.slane %v1517_v34, 1  ;;  %p2909_p1 = scmp.ne.s32.totalorder %s4180_s11, %s2908_s27  ;;  %s3003_s22 = smov [#allocation9]  }
 0x14c   : > { %s2143_s5 = scalar_lea.sflag [#allocation6], %s4302_s14  ;;  %s2912_s3 = sshll.u32 %s3003_s22, 4  ;;  %s2913_s3 = int_to_ptr.vmem [resolvable:$false] %s2912_s3 }
 0x14d   : > { %v2140_v37 = vsel %vm834_vm6, %v2139_v35, %v2132_v36  ;;  %p2910_p8 = pnand %p2909_p1, %p3112_p13  ;;  %s2914_s1 = scalar_lea.vmem %s2913_s3, 6656 }
 0x14e   : > { %2660 = vst [vmem:[%s4300_s20 + $0xc8] sm:$0xff] %v2140_v37  ;;  %p2915_p2 = scmp.lt.s32.totalorder %s4180_s11, %s2913_s3  ;;  %p2916_p5 = scmp.lt.s32.totalorder %s2914_s1, %s2908_s27 }
 0x14f   : > { %p2911_p11 = pneg %p2910_p8 }
 0x150   : > { %s4178_s12 = scalar_lea.hbm %s4304_s4, %s2765_s25  ;;  %p2917_p7 = por %p2916_p5, %p2915_p2 }
 0x152   : > { %p2918_p6 = pnand %p2917_p7, %p2911_p11 }
 0x154   : > { %2921 = shalt.err (!%p2918_p6)
}
 0x155   : > { %s2922_s6 = scalar_lea.hbm %s4178_s12, 3328  ;;  %s2926_s17 = scalar_lea.hbm %s4304_s4, 6656 }
 0x156   : > { %p2923_p4 = scmp.ne.s32.totalorder %s4178_s12, %s2922_s6  ;;  %p2927_p0 = scmp.lt.s32.totalorder %s4178_s12, %s4304_s4 }
 0x157   : > { %p2928_p3 = scmp.lt.s32.totalorder %s2926_s17, %s2922_s6 }
 0x158   : > { %p2924_p9 = pnand %p2923_p4, %p3112_p13 }
 0x159   : > { %p2929_p1 = por %p2928_p3, %p2927_p0 }
 0x15a   : > { %p2925_p12 = pneg %p2924_p9 }
 0x15c   : > { %p2930_p8 = pnand %p2929_p1, %p2925_p12 }
 0x15e   : > { %2933 = shalt.err (!%p2930_p8)
}
 0x15f   : > { %s3004_s10 = smov 1664   ;;  %s3005_s30 = smov 104  }
 0x160   : > { %2772 = dma.vmem_to_hbm [thread:$0]  (%p3112_p13), %s4180_s11, 3328, %s4178_s12, %s2143_s5, %s3004_s10, %s3004_s10, %s3005_s30  }
 0x161 PF: > { %s4305_s7 = sld [smem:[#allocation14_spill]] }
 0x162   : > { %s4306_s15 = sld [smem:[#allocation20_spill]] }
 0x163   : > { %s4307_s13 = sld [smem:[#allocation19_spill]] }
 0x167   : > { %s2174_s21 = sand.u32 1, %s4305_s7  }
 0x168   : > { %p4308_p11 = scmp.ne.s32.totalorder %s4306_s15, 0  ;;  %s2175_s9 = scalar_lea.sflag [#allocation6], %s2174_s21 }
 0x16a   : > { %p2783_p2 = pnand %p2370_p10, %p4308_p11 }
 0x16c   : > { %p2784_p5 = pneg %p2783_p2 }
 0x16e   : > { %2969 = dma.done.wait (%p2784_p5), %s2175_s9, 3328  }
 0x16f   : > { %2971 = vsyncadd (%p2784_p5), %s2175_s9, 4294963968  ;;  %s24_s20 = sadd.s32 1, %s4307_s13   ;;  %s4309_s15 = sld [smem:[#allocation15_spill]] }
 0x170   : > { %p21_p7 = scmp.ge.s32.totalorder %s24_s20, 4   ;;  %s4310_s16 = sld [smem:[#allocation16_spill]] }
 0x171   : > { %s4311_s17 = sld [smem:[#allocation23_spill]] }
 0x172   : > { %s4312_s18 = sld [smem:[#allocation18_spill]]  ;;  %23 = sbr.rel (!%p21_p7) target bundleno = 15 (0xf), region = 127 }
 0x173   : > { %s4313_s19 = sld [smem:[#allocation21_spill]] }
 0x177   :  { %2180 = vsyncpa [#allocation5], 1 }
 0x178   :  { %2182 = vsyncpa [#allocation5 + $0x1], 1 }
 0x179   :  { %2183 = vsyncpa [#allocation8], 1 }
 0x17a   :  { %2184 = vsyncpa [#allocation6], 1 }
 0x17b   :  { %2186 = vsyncpa [#allocation6 + $0x1], 1 }

</bundles_post_ra>
